<compile_context>
chip_gen: v6e
topology: v6e:2x2x1
jax: 0.10.0
libtpu: 0.0.40
codegen_flags: <defaults>
</compile_context>

<pallas_src>
import functools

import jax
import jax.numpy as jnp
from jax.experimental import pallas as pl
from jax.experimental.pallas import tpu as pltpu


# ----------------------------------------------------------------------------
# Pallas kernel (M-on-lanes orientation)
#   refs: gi (T, 3H, tm)  BN+bias-folded input projection, time-major
#         W_hh (3H, H), b_hh[n-gate] (H, 1), conv weight (12, T*H), conv bias (12, 1)
#   out:  (12, tm) block of (12, M)      scratch: stacked hidden states (T*H, tm)
# ----------------------------------------------------------------------------
def gru_conv_kernel(gi_ref, whh_ref, bhn_ref, wc_ref, bc_ref, out_ref, hs_sc):
    T, g3, tm = gi_ref.shape
    H = g3 // 3

    whh = whh_ref[...]                                    # (3H, H)
    bhn = jnp.broadcast_to(bhn_ref[...], (H, tm))         # hoisted lane broadcast

    # --- Recurrent loop (static unroll: T == recent is small). ---
    h = jnp.zeros((H, tm), jnp.float32)
    for t in range(T):
        gi_t = gi_ref[t]                                  # (3H, tm)
        gh = jnp.dot(whh, h, preferred_element_type=jnp.float32)   # (3H, tm)
        # Sublane-aligned gate slices (H multiple of 8): whole-vreg selections.
        r = jax.nn.sigmoid(gi_t[:H] + gh[:H])
        z = jax.nn.sigmoid(gi_t[H:2 * H] + gh[H:2 * H])
        n = jnp.tanh(gi_t[2 * H:] + r * (gh[2 * H:] + bhn))
        h = (1.0 - z) * n + z * h
        hs_sc[t * H:(t + 1) * H, :] = h                   # static sublane offset

    # --- Conv2d(d_model, 12, kernel=(1, T)) == one (12, T*H) @ (T*H, tm) matmul. ---
    out = jnp.dot(wc_ref[...], hs_sc[...],
                  preferred_element_type=jnp.float32) + bc_ref[...]
    out_ref[...] = out.astype(out_ref.dtype)


def _num_tensorcores():
    """Best-effort count of TensorCores sharing one pallas_call grid (megacore)."""
    try:
        info = pltpu.get_tpu_info()
        for attr in ("num_cores", "core_count", "num_tensorcores", "tensorcore_count"):
            v = getattr(info, attr, None)
            if isinstance(v, int) and v > 0:
                return v
    except Exception:
        pass
    try:
        kind = jax.devices()[0].device_kind.lower()
    except Exception:
        return 1
    # 1 TC per device on v2/v3/v5e/v6e; v7x-style megacore chips expose 2.
    one_tc = ("v2", "v3", "v5e", "v5 lite", "v5lite", "v6e", "v6 lite", "v6lite")
    return 1 if any(s in kind for s in one_tc) else 2


def _pick_tm(M, num_cores, cap=512):
    """Lane-axis tile size: single block unless >= 2 TCs AND M splits into
    lane-dense (multiple-of-128) tiles, in which case give each core a block."""
    if num_cores >= 2:
        best = None
        t = 128
        while t <= min(M // num_cores, cap):
            if M % t == 0:
                best = t
            t += 128
        if best is not None:
            return best
    return M


def gru_module_forward(x_w, x_d, x_r, supports, params, *, tm=None):
    """Mirrors GRU.forward(x_w, x_d, x_r, supports) -> (out, supports, supports)."""
    B, C, N, T = x_r.shape
    H = params["w_hh"].shape[1]          # d_model
    M = B * N
    if tm is None:
        tm = _pick_tm(M, _num_tensorcores())
    assert M % tm == 0

    # BatchNorm2d statistics (training-mode batch stats, biased variance, eps=1e-5).
    # TODO(synk): in eval mode PyTorch uses running_mean/running_var; feed those
    # here instead of batch statistics for inference parity.
    mean = jnp.mean(x_r, axis=(0, 2, 3))
    var = jnp.mean((x_r - mean[None, :, None, None]) ** 2, axis=(0, 2, 3))
    invstd = 1.0 / jnp.sqrt(var + 1e-5)

    # Non-recurrent input projection with BN and the r/z hidden biases folded in,
    # computed once in the wrapper (tiny, lane-sparse C=4 never enters the kernel):
    #   gi[t, :, m] = W_ih' @ x[:, m, t] + (b_ih - W_ih @ (mean*invstd) + b_hh[r,z|0])
    w_ih = params["w_ih"]                                        # (3H, C)
    b_hh = params["b_hh"]
    wih_f = w_ih * invstd[None, :]                               # (3H, C)
    b_gi = (params["b_ih"] - w_ih @ (mean * invstd)
            + jnp.concatenate([b_hh[:2 * H], jnp.zeros((H,), b_hh.dtype)]))

    # (B, C, N, T) -> (T, C, M), m = b*N + n, then project to (T, 3H, M).
    xt = jnp.transpose(x_r, (3, 1, 0, 2)).reshape(T, C, M)
    gi = (jnp.einsum("oc,tcm->tom", wih_f, xt)
          + b_gi[None, :, None]).astype(jnp.float32)             # (T, 3H, M)

    bhn = b_hh[2 * H:].reshape(H, 1)                             # n-gate hidden bias
    w_hh = params["w_hh"]                                        # (3H, H), used as-is

    # Conv weight (12, H, 1, T) -> (12, T*H) so the conv reduction is one matmul
    # against the stacked hidden states (row index of hs = t*H + h).
    wc = jnp.transpose(params["w_conv"][:, :, 0, :], (0, 2, 1)).reshape(12, T * H)
    bc = params["b_conv"].reshape(12, 1)

    grid = (M // tm,)

    # VMEM budget (double-buffered blocks + scratch + margin); keeps the tiling rule
    # honest on v7x's 64 MiB physical VMEM when the model is scaled up.
    block_bytes = (T * 3 * H * tm + 3 * H * H + H + 12 * T * H + 12 + 12 * tm) * 4
    scratch_bytes = T * H * tm * 4
    vmem_limit = int(min(64 << 20,
                         max(2 * block_bytes + scratch_bytes + (1 << 20), 32 << 20)))

    out_flat = pl.pallas_call(
        gru_conv_kernel,
        out_shape=jax.ShapeDtypeStruct((12, M), x_r.dtype),
        grid_spec=pltpu.PrefetchScalarGridSpec(
            num_scalar_prefetch=0,
            grid=grid,
            in_specs=[
                pl.BlockSpec((T, 3 * H, tm), lambda i: (0, 0, i)),   # gi, M on lanes
                pl.BlockSpec((3 * H, H), lambda i: (0, 0)),          # W_hh
                pl.BlockSpec((H, 1), lambda i: (0, 0)),              # b_hh[n gate]
                pl.BlockSpec((12, T * H), lambda i: (0, 0)),         # conv weight, flat
                pl.BlockSpec((12, 1), lambda i: (0, 0)),             # conv bias
            ],
            out_specs=pl.BlockSpec((12, tm), lambda i: (0, i)),      # lane-dense out
            scratch_shapes=[
                pltpu.VMEM((T * H, tm), jnp.float32),                # stacked h_t
            ],
        ),
        compiler_params=pltpu.CompilerParams(
            dimension_semantics=("parallel",),
            vmem_limit_bytes=vmem_limit),
    )(gi, w_hh, bhn, wc, bc)

    # (12, M) -> (B, N, 12)  ==  torch: conv(...).squeeze().permute(0, 2, 1)
    out = out_flat.T.reshape(B, N, 12)
    return out, supports, supports


# ----------------------------------------------------------------------------
# Pure-JAX reference (mirrors the PyTorch math) used for a correctness check.
# ----------------------------------------------------------------------------
def reference_forward(x_r, params):
    B, C, N, T = x_r.shape
    H = params["w_hh"].shape[1]
    mean = jnp.mean(x_r, axis=(0, 2, 3), keepdims=True)
    var = jnp.mean((x_r - mean) ** 2, axis=(0, 2, 3), keepdims=True)
    xn = (x_r - mean) / jnp.sqrt(var + 1e-5)
    x = jnp.transpose(xn, (0, 2, 3, 1)).reshape(B * N, T, C)

    h = jnp.zeros((B * N, H), jnp.float32)
    hs = []
    for t in range(T):
        gi = x[:, t, :] @ params["w_ih"].T + params["b_ih"]
        gh = h @ params["w_hh"].T + params["b_hh"]
        r = jax.nn.sigmoid(gi[:, :H] + gh[:, :H])
        z = jax.nn.sigmoid(gi[:, H:2 * H] + gh[:, H:2 * H])
        n = jnp.tanh(gi[:, 2 * H:] + r * gh[:, 2 * H:])
        h = (1.0 - z) * n + z * h
        hs.append(h)
    gru_out = jnp.stack(hs, axis=1)                              # (M, T, H)
    wc = jnp.transpose(params["w_conv"][:, :, 0, :], (2, 1, 0))  # (T, H, 12)
    out = jnp.einsum("mth,tho->mo", gru_out, wc) + params["b_conv"]
    return out.reshape(B, N, 12)


if __name__ == "__main__":
    # Module hyperparameters (small, consistent with the forward pass).
    B, c_in, num_nodes, d_model = 2, 4, 16, 32
    week, day, recent = 4, 4, 8

    key = jax.random.PRNGKey(0)
    ks = jax.random.split(key, 10)
    scale = 1.0 / jnp.sqrt(d_model)

    params = {
        "w_ih": jax.random.uniform(ks[0], (3 * d_model, c_in), jnp.float32, -scale, scale),
        "w_hh": jax.random.uniform(ks[1], (3 * d_model, d_model), jnp.float32, -scale, scale),
        "b_ih": jax.random.uniform(ks[2], (3 * d_model,), jnp.float32, -scale, scale),
        "b_hh": jax.random.uniform(ks[3], (3 * d_model,), jnp.float32, -scale, scale),
        "w_conv": jax.random.uniform(ks[4], (12, d_model, 1, recent), jnp.float32, -scale, scale),
        "b_conv": jax.random.uniform(ks[5], (12,), jnp.float32, -scale, scale),
    }

    x_w = jax.random.normal(ks[6], (B, c_in, num_nodes, week), jnp.float32)   # unused by forward
    x_d = jax.random.normal(ks[7], (B, c_in, num_nodes, day), jnp.float32)    # unused by forward
    x_r = jax.random.normal(ks[8], (B, c_in, num_nodes, recent), jnp.float32)
    supports = jax.random.normal(ks[9], (num_nodes, num_nodes), jnp.float32)

    fwd = jax.jit(functools.partial(gru_module_forward, params=params))
    out, s1, s2 = fwd(x_w, x_d, x_r, supports)
    jax.block_until_ready(out)

    ref = reference_forward(x_r, params)
    assert out.shape == (B, num_nodes, 12)
    assert jnp.allclose(out, ref, rtol=1e-4, atol=1e-4), "mismatch vs JAX reference"
    assert jnp.allclose(s1, supports) and jnp.allclose(s2, supports)

    print("KERNEL_OK")
</pallas_src>

<mosaic_0001>
module attributes {stable_mosaic.version = 11 : i64} {
  func.func @gru_conv_kernel(%arg0: i32, %arg1: memref<8x96x32xf32, #tpu.memory_space<vmem>>, %arg2: memref<96x32xf32, #tpu.memory_space<vmem>>, %arg3: memref<32x1xf32, #tpu.memory_space<vmem>>, %arg4: memref<12x256xf32, #tpu.memory_space<vmem>>, %arg5: memref<12x1xf32, #tpu.memory_space<vmem>>, %arg6: memref<12x32xf32, #tpu.memory_space<vmem>>, %arg7: memref<256x32xf32, #tpu.memory_space<vmem>>) attributes {dimension_semantics = [#tpu.dimension_semantics<parallel>], iteration_bounds = array<i64: 1>, scalar_prefetch = 0 : i64, scratch_operands = 1 : i64, tpu.core_type = #tpu.core_type<tc>, window_params = [{transform_indices = @transform_0, window_bounds = array<i64: 8, 96, 32>}, {pipeline_mode = #tpu.pipeline_mode<synchronous>, transform_indices = @transform_1, window_bounds = array<i64: 96, 32>}, {pipeline_mode = #tpu.pipeline_mode<synchronous>, transform_indices = @transform_2, window_bounds = array<i64: 32, 1>}, {pipeline_mode = #tpu.pipeline_mode<synchronous>, transform_indices = @transform_3, window_bounds = array<i64: 12, 256>}, {pipeline_mode = #tpu.pipeline_mode<synchronous>, transform_indices = @transform_4, window_bounds = array<i64: 12, 1>}, {transform_indices = @transform_5, window_bounds = array<i64: 12, 32>}]} {
    %c0 = arith.constant 0 : index
    %c0_0 = arith.constant 0 : index
    %0 = vector.load %arg2[%c0, %c0_0] : memref<96x32xf32, #tpu.memory_space<vmem>>, vector<96x32xf32>
    %c0_1 = arith.constant 0 : index
    %c0_2 = arith.constant 0 : index
    %1 = vector.load %arg3[%c0_1, %c0_2] : memref<32x1xf32, #tpu.memory_space<vmem>>, vector<32x1xf32>
    %2 = vector.shape_cast %1 : vector<32x1xf32> to vector<32x1xf32>
    %3 = vector.broadcast %2 : vector<32x1xf32> to vector<32x32xf32>
    %cst = arith.constant 0.000000e+00 : f32
    %4 = vector.broadcast %cst : f32 to vector<32x32xf32>
    %c0_3 = arith.constant 0 : index
    %c0_4 = arith.constant 0 : index
    %c0_5 = arith.constant 0 : index
    %5 = vector.load %arg1[%c0_3, %c0_4, %c0_5] : memref<8x96x32xf32, #tpu.memory_space<vmem>>, vector<1x96x32xf32>
    %6 = vector.shape_cast %5 : vector<1x96x32xf32> to vector<96x32xf32>
    %cst_6 = arith.constant dense<0.000000e+00> : vector<96x32xf32>
    %7 = tpu.matmul %0, %4, %cst_6 {dimension_numbers = #tpu.dot_dimension_numbers<[1], [0], [0], [1], [0, 0, 1, 1], [], []>} : vector<96x32xf32>, vector<32x32xf32>, vector<96x32xf32> -> vector<96x32xf32>
    %8 = vector.extract_strided_slice %6 {offsets = [0, 0], sizes = [32, 32], strides = [1, 1]} : vector<96x32xf32> to vector<32x32xf32>
    %9 = vector.extract_strided_slice %7 {offsets = [0, 0], sizes = [32, 32], strides = [1, 1]} : vector<96x32xf32> to vector<32x32xf32>
    %10 = arith.addf %8, %9 : vector<32x32xf32>
    %11 = arith.negf %10 : vector<32x32xf32>
    %12 = math.exp %11 : vector<32x32xf32>
    %cst_7 = arith.constant 1.000000e+00 : f32
    %13 = vector.broadcast %cst_7 : f32 to vector<32x32xf32>
    %14 = arith.addf %13, %12 : vector<32x32xf32>
    %15 = arith.divf %13, %14 : vector<32x32xf32>
    %16 = vector.extract_strided_slice %6 {offsets = [32, 0], sizes = [32, 32], strides = [1, 1]} : vector<96x32xf32> to vector<32x32xf32>
    %17 = vector.extract_strided_slice %7 {offsets = [32, 0], sizes = [32, 32], strides = [1, 1]} : vector<96x32xf32> to vector<32x32xf32>
    %18 = arith.addf %16, %17 : vector<32x32xf32>
    %19 = arith.negf %18 : vector<32x32xf32>
    %20 = math.exp %19 : vector<32x32xf32>
    %cst_8 = arith.constant 1.000000e+00 : f32
    %21 = vector.broadcast %cst_8 : f32 to vector<32x32xf32>
    %22 = arith.addf %21, %20 : vector<32x32xf32>
    %23 = arith.divf %21, %22 : vector<32x32xf32>
    %24 = vector.extract_strided_slice %6 {offsets = [64, 0], sizes = [32, 32], strides = [1, 1]} : vector<96x32xf32> to vector<32x32xf32>
    %25 = vector.extract_strided_slice %7 {offsets = [64, 0], sizes = [32, 32], strides = [1, 1]} : vector<96x32xf32> to vector<32x32xf32>
    %26 = arith.addf %25, %3 : vector<32x32xf32>
    %27 = arith.mulf %15, %26 : vector<32x32xf32>
    %28 = arith.addf %24, %27 : vector<32x32xf32>
    %29 = math.tanh %28 : vector<32x32xf32>
    %cst_9 = arith.constant 1.000000e+00 : f32
    %30 = vector.broadcast %cst_9 : f32 to vector<32x32xf32>
    %31 = arith.subf %30, %23 : vector<32x32xf32>
    %32 = arith.mulf %31, %29 : vector<32x32xf32>
    %33 = arith.mulf %23, %4 : vector<32x32xf32>
    %34 = arith.addf %32, %33 : vector<32x32xf32>
    %c0_10 = arith.constant 0 : index
    %c0_11 = arith.constant 0 : index
    %35 = vector.load %arg7[%c0_10, %c0_11] : memref<256x32xf32, #tpu.memory_space<vmem>>, vector<32x32xf32>
    tpu.vector_store %arg7[%c0_10, %c0_11], %34 {strides = array<i32>} : memref<256x32xf32, #tpu.memory_space<vmem>>, vector<32x32xf32>,
    %c1 = arith.constant 1 : index
    %c0_12 = arith.constant 0 : index
    %c0_13 = arith.constant 0 : index
    %36 = vector.load %arg1[%c1, %c0_12, %c0_13] : memref<8x96x32xf32, #tpu.memory_space<vmem>>, vector<1x96x32xf32>
    %37 = vector.shape_cast %36 : vector<1x96x32xf32> to vector<96x32xf32>
    %cst_14 = arith.constant dense<0.000000e+00> : vector<96x32xf32>
    %38 = tpu.matmul %0, %34, %cst_14 {dimension_numbers = #tpu.dot_dimension_numbers<[1], [0], [0], [1], [0, 0, 1, 1], [], []>} : vector<96x32xf32>, vector<32x32xf32>, vector<96x32xf32> -> vector<96x32xf32>
    %39 = vector.extract_strided_slice %37 {offsets = [0, 0], sizes = [32, 32], strides = [1, 1]} : vector<96x32xf32> to vector<32x32xf32>
    %40 = vector.extract_strided_slice %38 {offsets = [0, 0], sizes = [32, 32], strides = [1, 1]} : vector<96x32xf32> to vector<32x32xf32>
    %41 = arith.addf %39, %40 : vector<32x32xf32>
    %42 = arith.negf %41 : vector<32x32xf32>
    %43 = math.exp %42 : vector<32x32xf32>
    %cst_15 = arith.constant 1.000000e+00 : f32
    %44 = vector.broadcast %cst_15 : f32 to vector<32x32xf32>
    %45 = arith.addf %44, %43 : vector<32x32xf32>
    %46 = arith.divf %44, %45 : vector<32x32xf32>
    %47 = vector.extract_strided_slice %37 {offsets = [32, 0], sizes = [32, 32], strides = [1, 1]} : vector<96x32xf32> to vector<32x32xf32>
    %48 = vector.extract_strided_slice %38 {offsets = [32, 0], sizes = [32, 32], strides = [1, 1]} : vector<96x32xf32> to vector<32x32xf32>
    %49 = arith.addf %47, %48 : vector<32x32xf32>
    %50 = arith.negf %49 : vector<32x32xf32>
    %51 = math.exp %50 : vector<32x32xf32>
    %cst_16 = arith.constant 1.000000e+00 : f32
    %52 = vector.broadcast %cst_16 : f32 to vector<32x32xf32>
    %53 = arith.addf %52, %51 : vector<32x32xf32>
    %54 = arith.divf %52, %53 : vector<32x32xf32>
    %55 = vector.extract_strided_slice %37 {offsets = [64, 0], sizes = [32, 32], strides = [1, 1]} : vector<96x32xf32> to vector<32x32xf32>
    %56 = vector.extract_strided_slice %38 {offsets = [64, 0], sizes = [32, 32], strides = [1, 1]} : vector<96x32xf32> to vector<32x32xf32>
    %57 = arith.addf %56, %3 : vector<32x32xf32>
    %58 = arith.mulf %46, %57 : vector<32x32xf32>
    %59 = arith.addf %55, %58 : vector<32x32xf32>
    %60 = math.tanh %59 : vector<32x32xf32>
    %cst_17 = arith.constant 1.000000e+00 : f32
    %61 = vector.broadcast %cst_17 : f32 to vector<32x32xf32>
    %62 = arith.subf %61, %54 : vector<32x32xf32>
    %63 = arith.mulf %62, %60 : vector<32x32xf32>
    %64 = arith.mulf %54, %34 : vector<32x32xf32>
    %65 = arith.addf %63, %64 : vector<32x32xf32>
    %c32 = arith.constant 32 : index
    %c0_18 = arith.constant 0 : index
    %66 = vector.load %arg7[%c32, %c0_18] : memref<256x32xf32, #tpu.memory_space<vmem>>, vector<32x32xf32>
    tpu.vector_store %arg7[%c32, %c0_18], %65 {strides = array<i32>} : memref<256x32xf32, #tpu.memory_space<vmem>>, vector<32x32xf32>,
    %c2 = arith.constant 2 : index
    %c0_19 = arith.constant 0 : index
    %c0_20 = arith.constant 0 : index
    %67 = vector.load %arg1[%c2, %c0_19, %c0_20] : memref<8x96x32xf32, #tpu.memory_space<vmem>>, vector<1x96x32xf32>
    %68 = vector.shape_cast %67 : vector<1x96x32xf32> to vector<96x32xf32>
    %cst_21 = arith.constant dense<0.000000e+00> : vector<96x32xf32>
    %69 = tpu.matmul %0, %65, %cst_21 {dimension_numbers = #tpu.dot_dimension_numbers<[1], [0], [0], [1], [0, 0, 1, 1], [], []>} : vector<96x32xf32>, vector<32x32xf32>, vector<96x32xf32> -> vector<96x32xf32>
    %70 = vector.extract_strided_slice %68 {offsets = [0, 0], sizes = [32, 32], strides = [1, 1]} : vector<96x32xf32> to vector<32x32xf32>
    %71 = vector.extract_strided_slice %69 {offsets = [0, 0], sizes = [32, 32], strides = [1, 1]} : vector<96x32xf32> to vector<32x32xf32>
    %72 = arith.addf %70, %71 : vector<32x32xf32>
    %73 = arith.negf %72 : vector<32x32xf32>
    %74 = math.exp %73 : vector<32x32xf32>
    %cst_22 = arith.constant 1.000000e+00 : f32
    %75 = vector.broadcast %cst_22 : f32 to vector<32x32xf32>
    %76 = arith.addf %75, %74 : vector<32x32xf32>
    %77 = arith.divf %75, %76 : vector<32x32xf32>
    %78 = vector.extract_strided_slice %68 {offsets = [32, 0], sizes = [32, 32], strides = [1, 1]} : vector<96x32xf32> to vector<32x32xf32>
    %79 = vector.extract_strided_slice %69 {offsets = [32, 0], sizes = [32, 32], strides = [1, 1]} : vector<96x32xf32> to vector<32x32xf32>
    %80 = arith.addf %78, %79 : vector<32x32xf32>
    %81 = arith.negf %80 : vector<32x32xf32>
    %82 = math.exp %81 : vector<32x32xf32>
    %cst_23 = arith.constant 1.000000e+00 : f32
    %83 = vector.broadcast %cst_23 : f32 to vector<32x32xf32>
    %84 = arith.addf %83, %82 : vector<32x32xf32>
    %85 = arith.divf %83, %84 : vector<32x32xf32>
    %86 = vector.extract_strided_slice %68 {offsets = [64, 0], sizes = [32, 32], strides = [1, 1]} : vector<96x32xf32> to vector<32x32xf32>
    %87 = vector.extract_strided_slice %69 {offsets = [64, 0], sizes = [32, 32], strides = [1, 1]} : vector<96x32xf32> to vector<32x32xf32>
    %88 = arith.addf %87, %3 : vector<32x32xf32>
    %89 = arith.mulf %77, %88 : vector<32x32xf32>
    %90 = arith.addf %86, %89 : vector<32x32xf32>
    %91 = math.tanh %90 : vector<32x32xf32>
    %cst_24 = arith.constant 1.000000e+00 : f32
    %92 = vector.broadcast %cst_24 : f32 to vector<32x32xf32>
    %93 = arith.subf %92, %85 : vector<32x32xf32>
    %94 = arith.mulf %93, %91 : vector<32x32xf32>
    %95 = arith.mulf %85, %65 : vector<32x32xf32>
    %96 = arith.addf %94, %95 : vector<32x32xf32>
    %c64 = arith.constant 64 : index
    %c0_25 = arith.constant 0 : index
    %97 = vector.load %arg7[%c64, %c0_25] : memref<256x32xf32, #tpu.memory_space<vmem>>, vector<32x32xf32>
    tpu.vector_store %arg7[%c64, %c0_25], %96 {strides = array<i32>} : memref<256x32xf32, #tpu.memory_space<vmem>>, vector<32x32xf32>,
    %c3 = arith.constant 3 : index
    %c0_26 = arith.constant 0 : index
    %c0_27 = arith.constant 0 : index
    %98 = vector.load %arg1[%c3, %c0_26, %c0_27] : memref<8x96x32xf32, #tpu.memory_space<vmem>>, vector<1x96x32xf32>
    %99 = vector.shape_cast %98 : vector<1x96x32xf32> to vector<96x32xf32>
    %cst_28 = arith.constant dense<0.000000e+00> : vector<96x32xf32>
    %100 = tpu.matmul %0, %96, %cst_28 {dimension_numbers = #tpu.dot_dimension_numbers<[1], [0], [0], [1], [0, 0, 1, 1], [], []>} : vector<96x32xf32>, vector<32x32xf32>, vector<96x32xf32> -> vector<96x32xf32>
    %101 = vector.extract_strided_slice %99 {offsets = [0, 0], sizes = [32, 32], strides = [1, 1]} : vector<96x32xf32> to vector<32x32xf32>
    %102 = vector.extract_strided_slice %100 {offsets = [0, 0], sizes = [32, 32], strides = [1, 1]} : vector<96x32xf32> to vector<32x32xf32>
    %103 = arith.addf %101, %102 : vector<32x32xf32>
    %104 = arith.negf %103 : vector<32x32xf32>
    %105 = math.exp %104 : vector<32x32xf32>
    %cst_29 = arith.constant 1.000000e+00 : f32
    %106 = vector.broadcast %cst_29 : f32 to vector<32x32xf32>
    %107 = arith.addf %106, %105 : vector<32x32xf32>
    %108 = arith.divf %106, %107 : vector<32x32xf32>
    %109 = vector.extract_strided_slice %99 {offsets = [32, 0], sizes = [32, 32], strides = [1, 1]} : vector<96x32xf32> to vector<32x32xf32>
    %110 = vector.extract_strided_slice %100 {offsets = [32, 0], sizes = [32, 32], strides = [1, 1]} : vector<96x32xf32> to vector<32x32xf32>
    %111 = arith.addf %109, %110 : vector<32x32xf32>
    %112 = arith.negf %111 : vector<32x32xf32>
    %113 = math.exp %112 : vector<32x32xf32>
    %cst_30 = arith.constant 1.000000e+00 : f32
    %114 = vector.broadcast %cst_30 : f32 to vector<32x32xf32>
    %115 = arith.addf %114, %113 : vector<32x32xf32>
    %116 = arith.divf %114, %115 : vector<32x32xf32>
    %117 = vector.extract_strided_slice %99 {offsets = [64, 0], sizes = [32, 32], strides = [1, 1]} : vector<96x32xf32> to vector<32x32xf32>
    %118 = vector.extract_strided_slice %100 {offsets = [64, 0], sizes = [32, 32], strides = [1, 1]} : vector<96x32xf32> to vector<32x32xf32>
    %119 = arith.addf %118, %3 : vector<32x32xf32>
    %120 = arith.mulf %108, %119 : vector<32x32xf32>
    %121 = arith.addf %117, %120 : vector<32x32xf32>
    %122 = math.tanh %121 : vector<32x32xf32>
    %cst_31 = arith.constant 1.000000e+00 : f32
    %123 = vector.broadcast %cst_31 : f32 to vector<32x32xf32>
    %124 = arith.subf %123, %116 : vector<32x32xf32>
    %125 = arith.mulf %124, %122 : vector<32x32xf32>
    %126 = arith.mulf %116, %96 : vector<32x32xf32>
    %127 = arith.addf %125, %126 : vector<32x32xf32>
    %c96 = arith.constant 96 : index
    %c0_32 = arith.constant 0 : index
    %128 = vector.load %arg7[%c96, %c0_32] : memref<256x32xf32, #tpu.memory_space<vmem>>, vector<32x32xf32>
    tpu.vector_store %arg7[%c96, %c0_32], %127 {strides = array<i32>} : memref<256x32xf32, #tpu.memory_space<vmem>>, vector<32x32xf32>,
    %c4 = arith.constant 4 : index
    %c0_33 = arith.constant 0 : index
    %c0_34 = arith.constant 0 : index
    %129 = vector.load %arg1[%c4, %c0_33, %c0_34] : memref<8x96x32xf32, #tpu.memory_space<vmem>>, vector<1x96x32xf32>
    %130 = vector.shape_cast %129 : vector<1x96x32xf32> to vector<96x32xf32>
    %cst_35 = arith.constant dense<0.000000e+00> : vector<96x32xf32>
    %131 = tpu.matmul %0, %127, %cst_35 {dimension_numbers = #tpu.dot_dimension_numbers<[1], [0], [0], [1], [0, 0, 1, 1], [], []>} : vector<96x32xf32>, vector<32x32xf32>, vector<96x32xf32> -> vector<96x32xf32>
    %132 = vector.extract_strided_slice %130 {offsets = [0, 0], sizes = [32, 32], strides = [1, 1]} : vector<96x32xf32> to vector<32x32xf32>
    %133 = vector.extract_strided_slice %131 {offsets = [0, 0], sizes = [32, 32], strides = [1, 1]} : vector<96x32xf32> to vector<32x32xf32>
    %134 = arith.addf %132, %133 : vector<32x32xf32>
    %135 = arith.negf %134 : vector<32x32xf32>
    %136 = math.exp %135 : vector<32x32xf32>
    %cst_36 = arith.constant 1.000000e+00 : f32
    %137 = vector.broadcast %cst_36 : f32 to vector<32x32xf32>
    %138 = arith.addf %137, %136 : vector<32x32xf32>
    %139 = arith.divf %137, %138 : vector<32x32xf32>
    %140 = vector.extract_strided_slice %130 {offsets = [32, 0], sizes = [32, 32], strides = [1, 1]} : vector<96x32xf32> to vector<32x32xf32>
    %141 = vector.extract_strided_slice %131 {offsets = [32, 0], sizes = [32, 32], strides = [1, 1]} : vector<96x32xf32> to vector<32x32xf32>
    %142 = arith.addf %140, %141 : vector<32x32xf32>
    %143 = arith.negf %142 : vector<32x32xf32>
    %144 = math.exp %143 : vector<32x32xf32>
    %cst_37 = arith.constant 1.000000e+00 : f32
    %145 = vector.broadcast %cst_37 : f32 to vector<32x32xf32>
    %146 = arith.addf %145, %144 : vector<32x32xf32>
    %147 = arith.divf %145, %146 : vector<32x32xf32>
    %148 = vector.extract_strided_slice %130 {offsets = [64, 0], sizes = [32, 32], strides = [1, 1]} : vector<96x32xf32> to vector<32x32xf32>
    %149 = vector.extract_strided_slice %131 {offsets = [64, 0], sizes = [32, 32], strides = [1, 1]} : vector<96x32xf32> to vector<32x32xf32>
    %150 = arith.addf %149, %3 : vector<32x32xf32>
    %151 = arith.mulf %139, %150 : vector<32x32xf32>
    %152 = arith.addf %148, %151 : vector<32x32xf32>
    %153 = math.tanh %152 : vector<32x32xf32>
    %cst_38 = arith.constant 1.000000e+00 : f32
    %154 = vector.broadcast %cst_38 : f32 to vector<32x32xf32>
    %155 = arith.subf %154, %147 : vector<32x32xf32>
    %156 = arith.mulf %155, %153 : vector<32x32xf32>
    %157 = arith.mulf %147, %127 : vector<32x32xf32>
    %158 = arith.addf %156, %157 : vector<32x32xf32>
    %c128 = arith.constant 128 : index
    %c0_39 = arith.constant 0 : index
    %159 = vector.load %arg7[%c128, %c0_39] : memref<256x32xf32, #tpu.memory_space<vmem>>, vector<32x32xf32>
    tpu.vector_store %arg7[%c128, %c0_39], %158 {strides = array<i32>} : memref<256x32xf32, #tpu.memory_space<vmem>>, vector<32x32xf32>,
    %c5 = arith.constant 5 : index
    %c0_40 = arith.constant 0 : index
    %c0_41 = arith.constant 0 : index
    %160 = vector.load %arg1[%c5, %c0_40, %c0_41] : memref<8x96x32xf32, #tpu.memory_space<vmem>>, vector<1x96x32xf32>
    %161 = vector.shape_cast %160 : vector<1x96x32xf32> to vector<96x32xf32>
    %cst_42 = arith.constant dense<0.000000e+00> : vector<96x32xf32>
    %162 = tpu.matmul %0, %158, %cst_42 {dimension_numbers = #tpu.dot_dimension_numbers<[1], [0], [0], [1], [0, 0, 1, 1], [], []>} : vector<96x32xf32>, vector<32x32xf32>, vector<96x32xf32> -> vector<96x32xf32>
    %163 = vector.extract_strided_slice %161 {offsets = [0, 0], sizes = [32, 32], strides = [1, 1]} : vector<96x32xf32> to vector<32x32xf32>
    %164 = vector.extract_strided_slice %162 {offsets = [0, 0], sizes = [32, 32], strides = [1, 1]} : vector<96x32xf32> to vector<32x32xf32>
    %165 = arith.addf %163, %164 : vector<32x32xf32>
    %166 = arith.negf %165 : vector<32x32xf32>
    %167 = math.exp %166 : vector<32x32xf32>
    %cst_43 = arith.constant 1.000000e+00 : f32
    %168 = vector.broadcast %cst_43 : f32 to vector<32x32xf32>
    %169 = arith.addf %168, %167 : vector<32x32xf32>
    %170 = arith.divf %168, %169 : vector<32x32xf32>
    %171 = vector.extract_strided_slice %161 {offsets = [32, 0], sizes = [32, 32], strides = [1, 1]} : vector<96x32xf32> to vector<32x32xf32>
    %172 = vector.extract_strided_slice %162 {offsets = [32, 0], sizes = [32, 32], strides = [1, 1]} : vector<96x32xf32> to vector<32x32xf32>
    %173 = arith.addf %171, %172 : vector<32x32xf32>
    %174 = arith.negf %173 : vector<32x32xf32>
    %175 = math.exp %174 : vector<32x32xf32>
    %cst_44 = arith.constant 1.000000e+00 : f32
    %176 = vector.broadcast %cst_44 : f32 to vector<32x32xf32>
    %177 = arith.addf %176, %175 : vector<32x32xf32>
    %178 = arith.divf %176, %177 : vector<32x32xf32>
    %179 = vector.extract_strided_slice %161 {offsets = [64, 0], sizes = [32, 32], strides = [1, 1]} : vector<96x32xf32> to vector<32x32xf32>
    %180 = vector.extract_strided_slice %162 {offsets = [64, 0], sizes = [32, 32], strides = [1, 1]} : vector<96x32xf32> to vector<32x32xf32>
    %181 = arith.addf %180, %3 : vector<32x32xf32>
    %182 = arith.mulf %170, %181 : vector<32x32xf32>
    %183 = arith.addf %179, %182 : vector<32x32xf32>
    %184 = math.tanh %183 : vector<32x32xf32>
    %cst_45 = arith.constant 1.000000e+00 : f32
    %185 = vector.broadcast %cst_45 : f32 to vector<32x32xf32>
    %186 = arith.subf %185, %178 : vector<32x32xf32>
    %187 = arith.mulf %186, %184 : vector<32x32xf32>
    %188 = arith.mulf %178, %158 : vector<32x32xf32>
    %189 = arith.addf %187, %188 : vector<32x32xf32>
    %c160 = arith.constant 160 : index
    %c0_46 = arith.constant 0 : index
    %190 = vector.load %arg7[%c160, %c0_46] : memref<256x32xf32, #tpu.memory_space<vmem>>, vector<32x32xf32>
    tpu.vector_store %arg7[%c160, %c0_46], %189 {strides = array<i32>} : memref<256x32xf32, #tpu.memory_space<vmem>>, vector<32x32xf32>,
    %c6 = arith.constant 6 : index
    %c0_47 = arith.constant 0 : index
    %c0_48 = arith.constant 0 : index
    %191 = vector.load %arg1[%c6, %c0_47, %c0_48] : memref<8x96x32xf32, #tpu.memory_space<vmem>>, vector<1x96x32xf32>
    %192 = vector.shape_cast %191 : vector<1x96x32xf32> to vector<96x32xf32>
    %cst_49 = arith.constant dense<0.000000e+00> : vector<96x32xf32>
    %193 = tpu.matmul %0, %189, %cst_49 {dimension_numbers = #tpu.dot_dimension_numbers<[1], [0], [0], [1], [0, 0, 1, 1], [], []>} : vector<96x32xf32>, vector<32x32xf32>, vector<96x32xf32> -> vector<96x32xf32>
    %194 = vector.extract_strided_slice %192 {offsets = [0, 0], sizes = [32, 32], strides = [1, 1]} : vector<96x32xf32> to vector<32x32xf32>
    %195 = vector.extract_strided_slice %193 {offsets = [0, 0], sizes = [32, 32], strides = [1, 1]} : vector<96x32xf32> to vector<32x32xf32>
    %196 = arith.addf %194, %195 : vector<32x32xf32>
    %197 = arith.negf %196 : vector<32x32xf32>
    %198 = math.exp %197 : vector<32x32xf32>
    %cst_50 = arith.constant 1.000000e+00 : f32
    %199 = vector.broadcast %cst_50 : f32 to vector<32x32xf32>
    %200 = arith.addf %199, %198 : vector<32x32xf32>
    %201 = arith.divf %199, %200 : vector<32x32xf32>
    %202 = vector.extract_strided_slice %192 {offsets = [32, 0], sizes = [32, 32], strides = [1, 1]} : vector<96x32xf32> to vector<32x32xf32>
    %203 = vector.extract_strided_slice %193 {offsets = [32, 0], sizes = [32, 32], strides = [1, 1]} : vector<96x32xf32> to vector<32x32xf32>
    %204 = arith.addf %202, %203 : vector<32x32xf32>
    %205 = arith.negf %204 : vector<32x32xf32>
    %206 = math.exp %205 : vector<32x32xf32>
    %cst_51 = arith.constant 1.000000e+00 : f32
    %207 = vector.broadcast %cst_51 : f32 to vector<32x32xf32>
    %208 = arith.addf %207, %206 : vector<32x32xf32>
    %209 = arith.divf %207, %208 : vector<32x32xf32>
    %210 = vector.extract_strided_slice %192 {offsets = [64, 0], sizes = [32, 32], strides = [1, 1]} : vector<96x32xf32> to vector<32x32xf32>
    %211 = vector.extract_strided_slice %193 {offsets = [64, 0], sizes = [32, 32], strides = [1, 1]} : vector<96x32xf32> to vector<32x32xf32>
    %212 = arith.addf %211, %3 : vector<32x32xf32>
    %213 = arith.mulf %201, %212 : vector<32x32xf32>
    %214 = arith.addf %210, %213 : vector<32x32xf32>
    %215 = math.tanh %214 : vector<32x32xf32>
    %cst_52 = arith.constant 1.000000e+00 : f32
    %216 = vector.broadcast %cst_52 : f32 to vector<32x32xf32>
    %217 = arith.subf %216, %209 : vector<32x32xf32>
    %218 = arith.mulf %217, %215 : vector<32x32xf32>
    %219 = arith.mulf %209, %189 : vector<32x32xf32>
    %220 = arith.addf %218, %219 : vector<32x32xf32>
    %c192 = arith.constant 192 : index
    %c0_53 = arith.constant 0 : index
    %221 = vector.load %arg7[%c192, %c0_53] : memref<256x32xf32, #tpu.memory_space<vmem>>, vector<32x32xf32>
    tpu.vector_store %arg7[%c192, %c0_53], %220 {strides = array<i32>} : memref<256x32xf32, #tpu.memory_space<vmem>>, vector<32x32xf32>,
    %c7 = arith.constant 7 : index
    %c0_54 = arith.constant 0 : index
    %c0_55 = arith.constant 0 : index
    %222 = vector.load %arg1[%c7, %c0_54, %c0_55] : memref<8x96x32xf32, #tpu.memory_space<vmem>>, vector<1x96x32xf32>
    %223 = vector.shape_cast %222 : vector<1x96x32xf32> to vector<96x32xf32>
    %cst_56 = arith.constant dense<0.000000e+00> : vector<96x32xf32>
    %224 = tpu.matmul %0, %220, %cst_56 {dimension_numbers = #tpu.dot_dimension_numbers<[1], [0], [0], [1], [0, 0, 1, 1], [], []>} : vector<96x32xf32>, vector<32x32xf32>, vector<96x32xf32> -> vector<96x32xf32>
    %225 = vector.extract_strided_slice %223 {offsets = [0, 0], sizes = [32, 32], strides = [1, 1]} : vector<96x32xf32> to vector<32x32xf32>
    %226 = vector.extract_strided_slice %224 {offsets = [0, 0], sizes = [32, 32], strides = [1, 1]} : vector<96x32xf32> to vector<32x32xf32>
    %227 = arith.addf %225, %226 : vector<32x32xf32>
    %228 = arith.negf %227 : vector<32x32xf32>
    %229 = math.exp %228 : vector<32x32xf32>
    %cst_57 = arith.constant 1.000000e+00 : f32
    %230 = vector.broadcast %cst_57 : f32 to vector<32x32xf32>
    %231 = arith.addf %230, %229 : vector<32x32xf32>
    %232 = arith.divf %230, %231 : vector<32x32xf32>
    %233 = vector.extract_strided_slice %223 {offsets = [32, 0], sizes = [32, 32], strides = [1, 1]} : vector<96x32xf32> to vector<32x32xf32>
    %234 = vector.extract_strided_slice %224 {offsets = [32, 0], sizes = [32, 32], strides = [1, 1]} : vector<96x32xf32> to vector<32x32xf32>
    %235 = arith.addf %233, %234 : vector<32x32xf32>
    %236 = arith.negf %235 : vector<32x32xf32>
    %237 = math.exp %236 : vector<32x32xf32>
    %cst_58 = arith.constant 1.000000e+00 : f32
    %238 = vector.broadcast %cst_58 : f32 to vector<32x32xf32>
    %239 = arith.addf %238, %237 : vector<32x32xf32>
    %240 = arith.divf %238, %239 : vector<32x32xf32>
    %241 = vector.extract_strided_slice %223 {offsets = [64, 0], sizes = [32, 32], strides = [1, 1]} : vector<96x32xf32> to vector<32x32xf32>
    %242 = vector.extract_strided_slice %224 {offsets = [64, 0], sizes = [32, 32], strides = [1, 1]} : vector<96x32xf32> to vector<32x32xf32>
    %243 = arith.addf %242, %3 : vector<32x32xf32>
    %244 = arith.mulf %232, %243 : vector<32x32xf32>
    %245 = arith.addf %241, %244 : vector<32x32xf32>
    %246 = math.tanh %245 : vector<32x32xf32>
    %cst_59 = arith.constant 1.000000e+00 : f32
    %247 = vector.broadcast %cst_59 : f32 to vector<32x32xf32>
    %248 = arith.subf %247, %240 : vector<32x32xf32>
    %249 = arith.mulf %248, %246 : vector<32x32xf32>
    %250 = arith.mulf %240, %220 : vector<32x32xf32>
    %251 = arith.addf %249, %250 : vector<32x32xf32>
    %c224 = arith.constant 224 : index
    %c0_60 = arith.constant 0 : index
    %252 = vector.load %arg7[%c224, %c0_60] : memref<256x32xf32, #tpu.memory_space<vmem>>, vector<32x32xf32>
    tpu.vector_store %arg7[%c224, %c0_60], %251 {strides = array<i32>} : memref<256x32xf32, #tpu.memory_space<vmem>>, vector<32x32xf32>,
    %c0_61 = arith.constant 0 : index
    %c0_62 = arith.constant 0 : index
    %253 = vector.load %arg4[%c0_61, %c0_62] : memref<12x256xf32, #tpu.memory_space<vmem>>, vector<12x256xf32>
    %c0_63 = arith.constant 0 : index
    %c0_64 = arith.constant 0 : index
    %254 = vector.load %arg7[%c0_63, %c0_64] : memref<256x32xf32, #tpu.memory_space<vmem>>, vector<256x32xf32>
    %cst_65 = arith.constant dense<0.000000e+00> : vector<12x32xf32>
    %255 = tpu.matmul %253, %254, %cst_65 {dimension_numbers = #tpu.dot_dimension_numbers<[1], [0], [0], [1], [0, 0, 1, 1], [], []>} : vector<12x256xf32>, vector<256x32xf32>, vector<12x32xf32> -> vector<12x32xf32>
    %c0_66 = arith.constant 0 : index
    %c0_67 = arith.constant 0 : index
    %256 = vector.load %arg5[%c0_66, %c0_67] : memref<12x1xf32, #tpu.memory_space<vmem>>, vector<12x1xf32>
    %257 = vector.broadcast %256 : vector<12x1xf32> to vector<12x32xf32>
    %258 = arith.addf %255, %257 : vector<12x32xf32>
    %c0_68 = arith.constant 0 : index
    %c0_69 = arith.constant 0 : index
    %259 = vector.load %arg6[%c0_68, %c0_69] : memref<12x32xf32, #tpu.memory_space<vmem>>, vector<12x32xf32>
    tpu.vector_store %arg6[%c0_68, %c0_69], %258 {strides = array<i32>} : memref<12x32xf32, #tpu.memory_space<vmem>>, vector<12x32xf32>,
    return
  }
  func.func @transform_0(%arg0: i32) -> (i32, i32, i32) {
    %c0_i32 = arith.constant 0 : i32
    %c0_i32_0 = arith.constant 0 : i32
    %c0_i32_1 = arith.constant 0 : i32
    return %c0_i32, %c0_i32_0, %arg0 : i32, i32, i32
  }
  func.func @transform_1(%arg0: i32) -> (i32, i32) {
    %c0_i32 = arith.constant 0 : i32
    %c0_i32_0 = arith.constant 0 : i32
    %c0_i32_1 = arith.constant 0 : i32
    return %c0_i32, %c0_i32_0 : i32, i32
  }
  func.func @transform_2(%arg0: i32) -> (i32, i32) {
    %c0_i32 = arith.constant 0 : i32
    %c0_i32_0 = arith.constant 0 : i32
    %c0_i32_1 = arith.constant 0 : i32
    return %c0_i32, %c0_i32_0 : i32, i32
  }
  func.func @transform_3(%arg0: i32) -> (i32, i32) {
    %c0_i32 = arith.constant 0 : i32
    %c0_i32_0 = arith.constant 0 : i32
    %c0_i32_1 = arith.constant 0 : i32
    return %c0_i32, %c0_i32_0 : i32, i32
  }
  func.func @transform_4(%arg0: i32) -> (i32, i32) {
    %c0_i32 = arith.constant 0 : i32
    %c0_i32_0 = arith.constant 0 : i32
    %c0_i32_1 = arith.constant 0 : i32
    return %c0_i32, %c0_i32_0 : i32, i32
  }
  func.func @transform_5(%arg0: i32) -> (i32, i32) {
    %c0_i32 = arith.constant 0 : i32
    %c0_i32_0 = arith.constant 0 : i32
    return %c0_i32, %arg0 : i32, i32
  }
}

</mosaic_0001>

<bundles_post_ra>
// kernel: gru_module_forward.1
= control target key start
LH: loop header
LB: loop body
LE: loop exit
PB: predicated region body
PF: predicated region fallthrough
CT: control target
= control target key end

     0   :  { %vm68_vm0 = vcmask 261120   ;;  %v3009_v0 = vmov 0.0   ;;  %v3010_v9 = vmov 0   ;;  %vm2056_vm1 = vcmask 257024   ;;  %s3918_s1 = inlined_call_operand.vmem [shape: f32[96,32], index: 1, kind: input, shape index: {}]   ;;  %s3919_s2 = inlined_call_operand.vmem [shape: f32[32,1], index: 2, kind: input, shape index: {}]   ;;  %s3920_s4 = inlined_call_operand.vmem [shape: f32[12,1], index: 4, kind: input, shape index: {}]   ;;  %s3921_s0 = inlined_call_operand.vmem [shape: f32[8,96,32], index: 0, kind: input, shape index: {}]   ;;  %s3922_s3 = inlined_call_operand.vmem [shape: f32[12,256], index: 3, kind: input, shape index: {}]   ;;  %s3923_s5 = inlined_call_operand.vmem [shape: f32[12,32], index: 5, kind: output, shape index: {}]  }
   0x1   :  { %2469 = vmatprep.subr.mxu0 %v3009_v0  ;;  %v3044_v1 = vld [vmem:[%s3918_s1] sm:$0xff]  ;;  %v3049_v2 = vld [vmem:[%s3918_s1 + $0x8] sm:$0xff]  ;;  %v3054_v3 = vld [vmem:[%s3918_s1 + $0x10] sm:$0xff]  ;;  %2671 = vmatprep.subr.mxu1 %v3009_v0 }
   0x2   :  { %2470 = vmatpush3.msra.mxu0 %v3009_v0  ;;  %2471 = vmatprep.mubr.msk.f32.mxu0 %vm68_vm0, %v3044_v1  ;;  %v3063_v4 = vld [vmem:[%s3918_s1 + $0x40] sm:$0xff]  ;;  %v3070_v5 = vld [vmem:[%s3918_s1 + $0x18] sm:$0xff]  ;;  %v3077_v6 = vld [vmem:[%s3918_s1 + $0x48] sm:$0xff] }
   0x3   :  { %2472 = vmatmul.mubr.msk.f32.vlgmr.msra.gmra.mxu0 %vm68_vm0, %v3049_v2  ;;  %2672 = vmatpush3.msra.mxu1 %v3009_v0  ;;  %v3082_v7 = vld [vmem:[%s3918_s1 + $0x50] sm:$0xff]  ;;  %v3087_v8 = vld [vmem:[%s3918_s1 + $0x20] sm:$0xff]  ;;  %v35_v10 = vld [vmem:[%s3919_s2 + $0x18] sm:$0xff] }
   0x4   :  { %2474 = vmatprep.mubr.msk.f32.mxu0 %vm68_vm0, %v3054_v3  ;;  %2483 = vmatprep.mubr.msk.f32.mxu1 %vm68_vm0, %v3063_v4  ;;  %v33_v11 = vld [vmem:[%s3919_s2 + $0x8] sm:$0xff]  ;;  %v3102_v12 = vld [vmem:[%s3918_s1 + $0x58] sm:$0xff]  ;;  %v34_v13 = vld [vmem:[%s3919_s2 + $0x10] sm:$0xff] }
   0x5   :  { %2484 = vmatmul.mubr.msk.f32.vlgmr.msra.gmra.mxu1 %vm68_vm0, %v3077_v6  ;;  %2675 = vset.pattern.permute.xlu0 %v3010_v9  ;;  %v3114_v14 = vld [vmem:[%s3918_s1 + $0x28] sm:$0xff]  ;;  %v3119_v15 = vld [vmem:[%s3918_s1 + $0x30] sm:$0xff]  ;;  %v32_v16 = vld [vmem:[%s3919_s2] sm:$0xff] }
   0x6   :  { %2486 = vmatprep.mubr.msk.f32.mxu1 %vm68_vm0, %v3082_v7  ;;  %53 = vperm.xlu0 %2675, %v35_v10   ;;  %v1968_v17 = vld [vmem:[%s3920_s4] sm:$0xff]  ;;  %v3138_v18 = vld [vmem:[%s3918_s1 + $0x38] sm:$0xff]  ;;  %v1969_v19 = vld [vmem:[%s3920_s4 + $0x8] sm:$0xf] }
   0x7   :  { %2475 = vmatmul.mubr.msk.f32.gmra.mxu0 %vm68_vm0, %v3070_v5  ;;  %2676 = vset.pattern.permute.xlu1 %v3010_v9  ;;  %v57_v20 = vld [vmem:[%s3921_s0 + $0x8] sm:$0xff]  ;;  %v56_v22 = vld [vmem:[%s3921_s0] sm:$0xff]  ;;  %v59_v25 = vld [vmem:[%s3921_s0 + $0x18] sm:$0xff] }
   0x8   :  { %2477 = vmatprep.mubr.msk.f32.mxu0 %vm68_vm0, %v3087_v8  ;;  %43 = vperm.xlu1 %2676, %v33_v11   ;;  %v58_v29 = vld [vmem:[%s3921_s0 + $0x10] sm:$0xff]  ;;  %v61_v33 = vld [vmem:[%s3921_s0 + $0x28] sm:$0xff]  ;;  %v60_v37 = vld [vmem:[%s3921_s0 + $0x20] sm:$0xff] }
   0x9   :  { %2487 = vmatmul.mubr.msk.f32.gmra.mxu1 %vm68_vm0, %v3102_v12  ;;  %v63_v41 = vld [vmem:[%s3921_s0 + $0x38] sm:$0xff]  ;;  %v62_v45 = vld [vmem:[%s3921_s0 + $0x30] sm:$0xff] }
   0xa   :  { %48 = vperm.xlu0 %2675, %v34_v13   ;;  %2497 = vmatprep.mubr.msk.f32.mxu1 %vm68_vm0, %v3044_v1 }
   0xb   :  { %2478 = vmatmul.mubr.msk.f32.gmra.mxu0 %vm68_vm0, %v3114_v14 }
   0xc   :  { %2480 = vmatprep.mubr.msk.f32.mxu0 %vm68_vm0, %v3119_v15  ;;  %38 = vperm.xlu1 %2676, %v32_v16  }
   0xe   :  { %1972 = vperm.xlu0 %2675, %v1968_v17  }
   0xf   :  { %2481 = vmatmul.mubr.msk.f32.gmra.mxu0 %vm68_vm0, %v3138_v18 }
  0x10   :  { %1977 = vperm.xlu1 %2676, %v1969_v19   ;;  %2523 = vmatprep.mubr.msk.f32.mxu0 %vm68_vm0, %v3044_v1 }
  0x81   :  { %v3173_v11 = vpop.permute.xlu0 %53 }
  0x83   :  { %v3171_v62 = vpop.permute.xlu1 %43 }
  0x87   :  { %v3176_v17 = vpop.permute.xlu1 %38 }
  0xc3   :  { %v2473_v21 = vpop.f32.mrf.mxu0 }
  0xc4   :  { %v231_v23 = vadd.f32 %v2473_v21, %v57_v20 }
  0xc5   :  { %v171_v24 = vpop.f32.mrf.mxu0  ;;  %v2485_v59 = vpop.f32.mrf.mxu1 }
  0xc6   :  { %v2075_v26 = vmul.f32 -1.442695, %v231_v23  ;;  %v230_v27 = vadd.f32 %v171_v24, %v56_v22  ;;  %v287_v13 = vadd.f32 %v2485_v59, %v3171_v62  ;;  %v65_v23 = vld [vmem:[%s3921_s0 + $0x48] sm:$0xff] }
  0xc7   :  { %v2476_v28 = vpop.f32.mrf.mxu0  ;;  %v211_v63 = vpop.f32.mrf.mxu1 }
  0xc8   :  { %2677 = vpow2.f32 %v2075_v26  ;;  %v2074_v30 = vmul.f32 -1.442695, %v230_v27  ;;  %v233_v31 = vadd.f32 %v2476_v28, %v59_v25  ;;  %v286_v25 = vadd.f32 %v211_v63, %v3176_v17  ;;  %v64_v28 = vld [vmem:[%s3921_s0 + $0x40] sm:$0xff] }
  0xc9   :  { %v181_v32 = vpop.f32.mrf.mxu0  ;;  %v2488_v19 = vpop.f32.mrf.mxu1 }
  0xca   :  { %2679 = vpow2.f32 %v2074_v30  ;;  %v2077_v34 = vmul.f32 -1.442695, %v233_v31  ;;  %v232_v35 = vadd.f32 %v181_v32, %v58_v29  ;;  %v289_v32 = vadd.f32 %v2488_v19, %v3173_v11  ;;  %v2083_v19 = vld [vmem:[%s3921_s0 + $0x68] sm:$0xff] }
  0xcb   :  { %v2479_v36 = vpop.f32.mrf.mxu0  ;;  %v221_v29 = vpop.f32.mrf.mxu1 }
  0xcc   :  { %2681 = vpow2.f32 %v2077_v34  ;;  %v2076_v38 = vmul.f32 -1.442695, %v232_v35  ;;  %v259_v39 = vadd.f32 %v2479_v36, %v61_v33  ;;  %v3186_v34 = vpop.permute.xlu0 %48  ;;  %v67_v35 = vld [vmem:[%s3921_s0 + $0x58] sm:$0xff] }
  0xcd   :  { %v191_v40 = vpop.f32.mrf.mxu0 }
  0xce   :  { %2683 = vpow2.f32 %v2076_v38  ;;  %v2079_v42 = vmul.f32 -1.442695, %v259_v39  ;;  %v258_v43 = vadd.f32 %v191_v40, %v60_v37  ;;  %v288_v38 = vadd.f32 %v221_v29, %v3186_v34  ;;  %v66_v40 = vld [vmem:[%s3921_s0 + $0x50] sm:$0xff] }
  0xcf   :  { %v2482_v44 = vpop.f32.mrf.mxu0 }
  0xd0   :  { %2685 = vpow2.f32 %v2079_v42  ;;  %v2078_v46 = vmul.f32 -1.442695, %v258_v43  ;;  %v261_v47 = vadd.f32 %v2482_v44, %v63_v41 }
  0xd1   :  { %v201_v48 = vpop.f32.mrf.mxu0 }
  0xd2   :  { %v2081_v49 = vmul.f32 -1.442695, %v261_v47  ;;  %v260_v50 = vadd.f32 %v201_v48, %v62_v45  ;;  %2687 = vpow2.f32 %v2078_v46 }
  0xd4   :  { %2689 = vpow2.f32 %v2081_v49  ;;  %v2080_v51 = vmul.f32 -1.442695, %v260_v50 }
  0xd5   :  { %v2678_v52 = vpop.eup %2677 }
  0xd6   :  { %v247_v53 = vadd.f32 1.0, %v2678_v52  ;;  %2691 = vpow2.f32 %v2080_v51 }
  0xd7   :  { %v2680_v54 = vpop.eup %2679 }
  0xd8   :  { %2693 = vrcp.f32 %v247_v53  ;;  %v246_v55 = vadd.f32 1.0, %v2680_v54 }
  0xd9   :  { %v2682_v56 = vpop.eup %2681 }
  0xda   :  { %2695 = vrcp.f32 %v246_v55  ;;  %v249_v57 = vadd.f32 1.0, %v2682_v56 }
  0xdb   :  { %v2684_v58 = vpop.eup %2683 }
  0xdc   :  { %2697 = vrcp.f32 %v249_v57  ;;  %v248_v60 = vadd.f32 1.0, %v2684_v58 }
  0xdd   :  { %v2686_v61 = vpop.eup %2685 }
  0xde   :  { %2699 = vrcp.f32 %v248_v60  ;;  %v275_v9 = vadd.f32 1.0, %v2686_v61 }
  0xdf   :  { %v2688_v0 = vpop.eup %2687 }
  0xe0   :  { %v274_v16 = vadd.f32 1.0, %v2688_v0  ;;  %2701 = vrcp.f32 %v275_v9 }
  0xe1   :  { %v2690_v10 = vpop.eup %2689 }
  0xe2   :  { %v277_v21 = vadd.f32 1.0, %v2690_v10  ;;  %2703 = vrcp.f32 %v274_v16 }
  0xe3   :  { %v2692_v20 = vpop.eup %2691 }
  0xe4   :  { %v276_v27 = vadd.f32 1.0, %v2692_v20  ;;  %2705 = vrcp.f32 %v277_v21  ;;  %v2082_v21 = vld [vmem:[%s3921_s0 + $0x60] sm:$0xff] }
  0xe5   :  { %v2694_v22 = vpop.eup %2693 }
  0xe6   :  { %v291_v24 = vmul.f32 %v2694_v22, %v287_v13 }
  0xe7   :  { %v2696_v26 = vpop.eup %2695 }
  0xe8   :  { %v295_v30 = vadd.f32 %v291_v24, %v65_v23  ;;  %v290_v31 = vmul.f32 %v2696_v26, %v286_v25  ;;  %v2085_v24 = vld [vmem:[%s3921_s0 + $0x78] sm:$0xff] }
  0xe9   :  { %v2698_v33 = vpop.eup %2697 }
  0xea   :  { %2707 = vtanh.f32 %v295_v30  ;;  %v294_v36 = vadd.f32 %v290_v31, %v64_v28  ;;  %v293_v37 = vmul.f32 %v2698_v33, %v289_v32  ;;  %v2084_v28 = vld [vmem:[%s3921_s0 + $0x70] sm:$0xff]  ;;  %v2087_v32 = vld [vmem:[%s3921_s0 + $0x88] sm:$0xff] }
  0xeb   :  { %v2700_v39 = vpop.eup %2699  ;;  %2709 = vrcp.f32 %v276_v27 }
  0xec   :  { %v297_v41 = vadd.f32 %v293_v37, %v67_v35  ;;  %v292_v42 = vmul.f32 %v2700_v39, %v288_v38  ;;  %2711 = vtanh.f32 %v294_v36  ;;  %v2086_v37 = vld [vmem:[%s3921_s0 + $0x80] sm:$0xff] }
  0xed   :  { %v2702_v44 = vpop.eup %2701 }
  0xee   :  { %2713 = vtanh.f32 %v297_v41  ;;  %v296_v43 = vadd.f32 %v292_v42, %v66_v40  ;;  %v303_v46 = vsub.f32 1.0, %v2702_v44  ;;  %v311_v52 = vmul.f32 0.0, %v2702_v44  ;;  %v2089_v41 = vld [vmem:[%s3921_s0 + $0x98] sm:$0xff] }
  0xef   :  { %v2704_v45 = vpop.eup %2703 }
  0xf0   :  { %2715 = vtanh.f32 %v296_v43  ;;  %v302_v53 = vsub.f32 1.0, %v2704_v45  ;;  %v310_v57 = vmul.f32 0.0, %v2704_v45  ;;  %v2088_v45 = vld [vmem:[%s3921_s0 + $0x90] sm:$0xff] }
  0xf1   :  { %v2706_v47 = vpop.eup %2705 }
  0xf2   :  { %v305_v50 = vsub.f32 1.0, %v2706_v47  ;;  %v313_v60 = vmul.f32 0.0, %v2706_v47 }
  0xf7   :  { %v2708_v48 = vpop.eup %2707 }
  0xf8   :  { %v2710_v49 = vpop.eup %2709  ;;  %v307_v51 = vmul.f32 %v2708_v48, %v303_v46 }
  0xf9   :  { %v2712_v54 = vpop.eup %2711  ;;  %v304_v61 = vsub.f32 1.0, %v2710_v49  ;;  %v312_v13 = vmul.f32 0.0, %v2710_v49 }
  0xfa   :  { %v3195_v55 = vadd.f32 %v311_v52, %v307_v51  ;;  %v306_v56 = vmul.f32 %v2712_v54, %v302_v53 }
  0xfb   :  { %v2714_v58 = vpop.eup %2713 }
  0xfc   :  { %v309_v59 = vmul.f32 %v2714_v58, %v305_v50  ;;  %319 = vst.msk [vmem:[#allocation2 + $0x8] sm:$0xff] %vm68_vm0, %v3195_v55  ;;  %v3199_v63 = vadd.f32 %v310_v57, %v306_v56 }
  0xfd   :  { %v2716_v0 = vpop.eup %2715 }
  0xfe   :  { %v3201_v9 = vadd.f32 %v313_v60, %v309_v59  ;;  %v308_v10 = vmul.f32 %v2716_v0, %v304_v61  ;;  %318 = vst.msk [vmem:[#allocation2] sm:$0xff] %vm68_vm0, %v3199_v63 }
 0x100   :  { %321 = vst.msk [vmem:[#allocation2 + $0x18] sm:$0xff] %vm68_vm0, %v3201_v9  ;;  %2489 = vmatprep.subr.mxu1 %v3201_v9  ;;  %v3208_v16 = vadd.f32 %v312_v13, %v308_v10 }
 0x101   :  { %2490 = vmatpush3.msra.mxu1 %v3201_v9 }
 0x102   :  { %320 = vst.msk [vmem:[#allocation2 + $0x10] sm:$0xff] %vm68_vm0, %v3208_v16  ;;  %2491 = vmatprep.subr.mxu1 %v3208_v16 }
 0x103   :  { %2492 = vmatpush3.msra.mxu1 %v3208_v16 }
 0x104   :  { %2493 = vmatprep.subr.mxu1 %v3195_v55 }
 0x105   :  { %2494 = vmatpush3.msra.mxu1 %v3195_v55 }
 0x106   :  { %2495 = vmatprep.subr.mxu1 %v3199_v63 }
 0x107   :  { %2496 = vmatpush3.msra.mxu1 %v3199_v63 }
 0x108   :  { %2498 = vmatmul.mubr.msk.f32.vlgmr.msra.gmra.mxu1 %vm68_vm0, %v3049_v2 }
 0x109   :  { %2500 = vmatprep.mubr.msk.f32.mxu1 %vm68_vm0, %v3054_v3 }
 0x10c   :  { %2501 = vmatmul.mubr.msk.f32.gmra.mxu1 %vm68_vm0, %v3070_v5 }
 0x10d   :  { %2503 = vmatprep.mubr.msk.f32.mxu1 %vm68_vm0, %v3087_v8 }
 0x110   :  { %2504 = vmatmul.mubr.msk.f32.gmra.mxu1 %vm68_vm0, %v3114_v14 }
 0x111   :  { %2506 = vmatprep.mubr.msk.f32.mxu1 %vm68_vm0, %v3119_v15 }
 0x114   :  { %2507 = vmatmul.mubr.msk.f32.gmra.mxu1 %vm68_vm0, %v3138_v18 }
 0x115   :  { %2509 = vmatprep.mubr.msk.f32.mxu1 %vm68_vm0, %v3063_v4 }
 0x118   :  { %2510 = vmatmul.mubr.msk.f32.gmra.mxu1 %vm68_vm0, %v3077_v6 }
 0x119   :  { %2512 = vmatprep.mubr.msk.f32.mxu1 %vm68_vm0, %v3082_v7 }
 0x11c   :  { %2513 = vmatmul.mubr.msk.f32.gmra.mxu1 %vm68_vm0, %v3102_v12 }
 0x11d   :  { %2549 = vmatprep.mubr.msk.f32.mxu1 %vm68_vm0, %v3044_v1 }
 0x1c8   :  { %v2499_v20 = vpop.f32.mrf.mxu1 }
 0x1c9   :  { %v461_v22 = vadd.f32 %v2499_v20, %v2083_v19 }
 0x1ca   :  { %v401_v23 = vpop.f32.mrf.mxu1 }
 0x1cb   :  { %v2107_v25 = vmul.f32 -1.442695, %v461_v22  ;;  %v460_v26 = vadd.f32 %v2082_v21, %v401_v23 }
 0x1cc   :  { %v2502_v27 = vpop.f32.mrf.mxu1 }
 0x1cd   :  { %2717 = vpow2.f32 %v2107_v25  ;;  %v2106_v29 = vmul.f32 -1.442695, %v460_v26  ;;  %v463_v30 = vadd.f32 %v2502_v27, %v2085_v24  ;;  %v2091_v26 = vld [vmem:[%s3921_s0 + $0xa8] sm:$0xff] }
 0x1ce   :  { %v411_v31 = vpop.f32.mrf.mxu1 }
 0x1cf   :  { %2719 = vpow2.f32 %v2106_v29  ;;  %v2109_v33 = vmul.f32 -1.442695, %v463_v30  ;;  %v462_v35 = vadd.f32 %v2084_v28, %v411_v31  ;;  %v2090_v31 = vld [vmem:[%s3921_s0 + $0xa0] sm:$0xff] }
 0x1d0   :  { %v2505_v36 = vpop.f32.mrf.mxu1 }
 0x1d1   :  { %2721 = vpow2.f32 %v2109_v33  ;;  %v2108_v38 = vmul.f32 -1.442695, %v462_v35  ;;  %v489_v39 = vadd.f32 %v2505_v36, %v2087_v32 }
 0x1d2   :  { %v421_v40 = vpop.f32.mrf.mxu1 }
 0x1d3   :  { %2723 = vpow2.f32 %v2108_v38  ;;  %v2111_v42 = vmul.f32 -1.442695, %v489_v39  ;;  %v488_v43 = vadd.f32 %v2086_v37, %v421_v40  ;;  %v2093_v39 = vld [vmem:[%s3921_s0 + $0xb8] sm:$0xff] }
 0x1d4   :  { %v2508_v44 = vpop.f32.mrf.mxu1 }
 0x1d5   :  { %v2110_v46 = vmul.f32 -1.442695, %v488_v43  ;;  %v491_v47 = vadd.f32 %v2508_v44, %v2089_v41  ;;  %2725 = vpow2.f32 %v2111_v42  ;;  %v2092_v44 = vld [vmem:[%s3921_s0 + $0xb0] sm:$0xff] }
 0x1d6   :  { %v431_v48 = vpop.f32.mrf.mxu1 }
 0x1d7   :  { %v2113_v49 = vmul.f32 -1.442695, %v491_v47  ;;  %v490_v50 = vadd.f32 %v2088_v45, %v431_v48  ;;  %2727 = vpow2.f32 %v2110_v46 }
 0x1d8   :  { %v2511_v60 = vpop.f32.mrf.mxu1 }
 0x1d9   :  { %2729 = vpow2.f32 %v2113_v49  ;;  %v2112_v52 = vmul.f32 -1.442695, %v490_v50  ;;  %v517_v23 = vadd.f32 %v2511_v60, %v3171_v62 }
 0x1da   :  { %v2718_v51 = vpop.eup %2717  ;;  %v441_v10 = vpop.f32.mrf.mxu1 }
 0x1db   :  { %v477_v53 = vadd.f32 1.0, %v2718_v51  ;;  %v516_v29 = vadd.f32 %v441_v10, %v3176_v17 }
 0x1dc   :  { %v2720_v54 = vpop.eup %2719  ;;  %v2514_v21 = vpop.f32.mrf.mxu1 }
 0x1dd   :  { %2731 = vrcp.f32 %v477_v53  ;;  %v476_v56 = vadd.f32 1.0, %v2720_v54  ;;  %v519_v36 = vadd.f32 %v2514_v21, %v3173_v11 }
 0x1de   :  { %v2722_v57 = vpop.eup %2721  ;;  %2733 = vpow2.f32 %v2112_v52  ;;  %v451_v32 = vpop.f32.mrf.mxu1 }
 0x1df   :  { %2735 = vrcp.f32 %v476_v56  ;;  %v479_v58 = vadd.f32 1.0, %v2722_v57  ;;  %v518_v42 = vadd.f32 %v451_v32, %v3186_v34  ;;  %v2116_v32 = vld [vmem:[%s3921_s0 + $0xd0] sm:$0xff] }
 0x1e0   :  { %v2724_v59 = vpop.eup %2723 }
 0x1e1   :  { %2737 = vrcp.f32 %v479_v58  ;;  %v478_v61 = vadd.f32 1.0, %v2724_v59 }
 0x1e2   :  { %v2726_v0 = vpop.eup %2725 }
 0x1e3   :  { %2739 = vrcp.f32 %v478_v61  ;;  %v505_v20 = vadd.f32 1.0, %v2726_v0 }
 0x1e4   :  { %v2728_v13 = vpop.eup %2727 }
 0x1e5   :  { %v504_v22 = vadd.f32 1.0, %v2728_v13  ;;  %2741 = vrcp.f32 %v505_v20 }
 0x1e6   :  { %v2730_v19 = vpop.eup %2729 }
 0x1e7   :  { %v507_v25 = vadd.f32 1.0, %v2730_v19  ;;  %2743 = vrcp.f32 %v504_v22 }
 0x1e9   :  { %2745 = vrcp.f32 %v507_v25  ;;  %v2114_v25 = vld [vmem:[%s3921_s0 + $0xc0] sm:$0xff] }
 0x1ea   :  { %v2732_v24 = vpop.eup %2731 }
 0x1eb   :  { %v2734_v27 = vpop.eup %2733  ;;  %v521_v28 = vmul.f32 %v2732_v24, %v517_v23 }
 0x1ec   :  { %v2736_v30 = vpop.eup %2735  ;;  %v506_v38 = vadd.f32 1.0, %v2734_v27 }
 0x1ed   :  { %v525_v33 = vadd.f32 %v2091_v26, %v521_v28  ;;  %v520_v35 = vmul.f32 %v2736_v30, %v516_v29  ;;  %v2117_v28 = vld [vmem:[%s3921_s0 + $0xd8] sm:$0xff] }
 0x1ee   :  { %v2738_v37 = vpop.eup %2737 }
 0x1ef   :  { %2747 = vtanh.f32 %v525_v33  ;;  %v524_v40 = vadd.f32 %v2090_v31, %v520_v35  ;;  %v523_v41 = vmul.f32 %v2738_v37, %v519_v36  ;;  %v2119_v37 = vld [vmem:[%s3921_s0 + $0xe8] sm:$0xff] }
 0x1f0   :  { %v2740_v43 = vpop.eup %2739 }
 0x1f1   :  { %2749 = vtanh.f32 %v524_v40  ;;  %v527_v45 = vadd.f32 %v2093_v39, %v523_v41  ;;  %v522_v46 = vmul.f32 %v2740_v43, %v518_v42  ;;  %v2118_v41 = vld [vmem:[%s3921_s0 + $0xe0] sm:$0xff] }
 0x1f2   :  { %2751 = vrcp.f32 %v506_v38  ;;  %v2742_v48 = vpop.eup %2741 }
 0x1f3   :  { %2753 = vtanh.f32 %v527_v45  ;;  %v526_v47 = vadd.f32 %v2092_v44, %v522_v46  ;;  %v533_v49 = vsub.f32 1.0, %v2742_v48  ;;  %v541_v56 = vmul.f32 %v2742_v48, %v3195_v55  ;;  %v2121_v45 = vld [vmem:[%s3921_s0 + $0xf8] sm:$0xff] }
 0x1f4   :  { %v2744_v50 = vpop.eup %2743 }
 0x1f5   :  { %2755 = vtanh.f32 %v526_v47  ;;  %v532_v57 = vsub.f32 1.0, %v2744_v50  ;;  %v540_v0 = vmul.f32 %v2744_v50, %v3199_v63 }
 0x1f6   :  { %v2746_v51 = vpop.eup %2745 }
 0x1f7   :  { %v535_v53 = vsub.f32 1.0, %v2746_v51  ;;  %v543_v19 = vmul.f32 %v2746_v51, %v3201_v9  ;;  %v2115_v9 = vld [vmem:[%s3921_s0 + $0xc8] sm:$0xff] }
 0x1fc   :  { %v2748_v52 = vpop.eup %2747 }
 0x1fd   :  { %v537_v54 = vmul.f32 %v2748_v52, %v533_v49  ;;  %v2120_v49 = vld [vmem:[%s3921_s0 + $0xf0] sm:$0xff] }
 0x1fe   :  { %v2750_v58 = vpop.eup %2749 }
 0x1ff   :  { %v2752_v59 = vpop.eup %2751  ;;  %v3284_v60 = vadd.f32 %v541_v56, %v537_v54  ;;  %v536_v61 = vmul.f32 %v2750_v58, %v532_v57 }
 0x200   :  { %v2754_v10 = vpop.eup %2753  ;;  %v534_v20 = vsub.f32 1.0, %v2752_v59  ;;  %v542_v24 = vmul.f32 %v2752_v59, %v3208_v16 }
 0x201   :  { %v539_v13 = vmul.f32 %v2754_v10, %v535_v53  ;;  %549 = vst.msk [vmem:[#allocation2 + $0x28] sm:$0xff] %vm68_vm0, %v3284_v60  ;;  %v3290_v21 = vadd.f32 %v540_v0, %v536_v61 }
 0x202   :  { %v2756_v22 = vpop.eup %2755 }
 0x203   :  { %v3292_v55 = vadd.f32 %v543_v19, %v539_v13  ;;  %v538_v23 = vmul.f32 %v2756_v22, %v534_v20  ;;  %548 = vst.msk [vmem:[#allocation2 + $0x20] sm:$0xff] %vm68_vm0, %v3290_v21 }
 0x205   :  { %551 = vst.msk [vmem:[#allocation2 + $0x38] sm:$0xff] %vm68_vm0, %v3292_v55  ;;  %2515 = vmatprep.subr.mxu0 %v3292_v55  ;;  %v3300_v63 = vadd.f32 %v542_v24, %v538_v23 }
 0x206   :  { %2516 = vmatpush3.msra.mxu0 %v3292_v55 }
 0x207   :  { %550 = vst.msk [vmem:[#allocation2 + $0x30] sm:$0xff] %vm68_vm0, %v3300_v63  ;;  %2517 = vmatprep.subr.mxu0 %v3300_v63 }
 0x208   :  { %2518 = vmatpush3.msra.mxu0 %v3300_v63 }
 0x209   :  { %2519 = vmatprep.subr.mxu0 %v3284_v60 }
 0x20a   :  { %2520 = vmatpush3.msra.mxu0 %v3284_v60 }
 0x20b   :  { %2521 = vmatprep.subr.mxu0 %v3290_v21 }
 0x20c   :  { %2522 = vmatpush3.msra.mxu0 %v3290_v21 }
 0x20d   :  { %2524 = vmatmul.mubr.msk.f32.vlgmr.msra.gmra.mxu0 %vm68_vm0, %v3049_v2 }
 0x20e   :  { %2526 = vmatprep.mubr.msk.f32.mxu0 %vm68_vm0, %v3054_v3 }
 0x211   :  { %2527 = vmatmul.mubr.msk.f32.gmra.mxu0 %vm68_vm0, %v3070_v5 }
 0x212   :  { %2529 = vmatprep.mubr.msk.f32.mxu0 %vm68_vm0, %v3087_v8 }
 0x215   :  { %2530 = vmatmul.mubr.msk.f32.gmra.mxu0 %vm68_vm0, %v3114_v14 }
 0x216   :  { %2532 = vmatprep.mubr.msk.f32.mxu0 %vm68_vm0, %v3119_v15 }
 0x219   :  { %2533 = vmatmul.mubr.msk.f32.gmra.mxu0 %vm68_vm0, %v3138_v18 }
 0x21a   :  { %2535 = vmatprep.mubr.msk.f32.mxu0 %vm68_vm0, %v3063_v4 }
 0x21d   :  { %2536 = vmatmul.mubr.msk.f32.gmra.mxu0 %vm68_vm0, %v3077_v6 }
 0x21e   :  { %2538 = vmatprep.mubr.msk.f32.mxu0 %vm68_vm0, %v3082_v7 }
 0x221   :  { %2539 = vmatmul.mubr.msk.f32.gmra.mxu0 %vm68_vm0, %v3102_v12 }
 0x222   :  { %2575 = vmatprep.mubr.msk.f32.mxu0 %vm68_vm0, %v3044_v1 }
 0x2cd   :  { %v2525_v16 = vpop.f32.mrf.mxu0 }
 0x2ce   :  { %v691_v26 = vadd.f32 %v2525_v16, %v2115_v9 }
 0x2cf   :  { %v631_v27 = vpop.f32.mrf.mxu0 }
 0x2d0   :  { %v2139_v29 = vmul.f32 -1.442695, %v691_v26  ;;  %v690_v30 = vadd.f32 %v2114_v25, %v631_v27 }
 0x2d1   :  { %v2528_v31 = vpop.f32.mrf.mxu0 }
 0x2d2   :  { %2757 = vpow2.f32 %v2139_v29  ;;  %v2138_v33 = vmul.f32 -1.442695, %v690_v30  ;;  %v693_v35 = vadd.f32 %v2528_v31, %v2117_v28  ;;  %v2123_v30 = vld [vmem:[%s3921_s0 + $0x108] sm:$0xff] }
 0x2d3   :  { %v641_v36 = vpop.f32.mrf.mxu0 }
 0x2d4   :  { %2759 = vpow2.f32 %v2138_v33  ;;  %v2141_v38 = vmul.f32 -1.442695, %v693_v35  ;;  %v692_v39 = vadd.f32 %v2116_v32, %v641_v36  ;;  %v2122_v36 = vld [vmem:[%s3921_s0 + $0x100] sm:$0xff] }
 0x2d5   :  { %v2531_v40 = vpop.f32.mrf.mxu0 }
 0x2d6   :  { %2761 = vpow2.f32 %v2141_v38  ;;  %v2140_v42 = vmul.f32 -1.442695, %v692_v39  ;;  %v719_v43 = vadd.f32 %v2531_v40, %v2119_v37 }
 0x2d7   :  { %v651_v44 = vpop.f32.mrf.mxu0 }
 0x2d8   :  { %2763 = vpow2.f32 %v2140_v42  ;;  %v2143_v46 = vmul.f32 -1.442695, %v719_v43  ;;  %v718_v47 = vadd.f32 %v2118_v41, %v651_v44  ;;  %v2125_v43 = vld [vmem:[%s3921_s0 + $0x118] sm:$0xff] }
 0x2d9   :  { %v2534_v48 = vpop.f32.mrf.mxu0 }
 0x2da   :  { %v2142_v50 = vmul.f32 -1.442695, %v718_v47  ;;  %v721_v51 = vadd.f32 %v2534_v48, %v2121_v45  ;;  %2765 = vpow2.f32 %v2143_v46  ;;  %v2124_v48 = vld [vmem:[%s3921_s0 + $0x110] sm:$0xff] }
 0x2db   :  { %v661_v52 = vpop.f32.mrf.mxu0 }
 0x2dc   :  { %v2145_v53 = vmul.f32 -1.442695, %v721_v51  ;;  %v720_v54 = vadd.f32 %v2120_v49, %v661_v52  ;;  %2767 = vpow2.f32 %v2142_v50 }
 0x2dd   :  { %v2537_v19 = vpop.f32.mrf.mxu0 }
 0x2de   :  { %2769 = vpow2.f32 %v2145_v53  ;;  %v2144_v57 = vmul.f32 -1.442695, %v720_v54  ;;  %v747_v27 = vadd.f32 %v2537_v19, %v3171_v62 }
 0x2df   :  { %v2758_v56 = vpop.eup %2757  ;;  %v671_v23 = vpop.f32.mrf.mxu0 }
 0x2e0   :  { %v707_v58 = vadd.f32 1.0, %v2758_v56  ;;  %v746_v33 = vadd.f32 %v671_v23, %v3176_v17 }
 0x2e1   :  { %v2760_v59 = vpop.eup %2759  ;;  %v2540_v25 = vpop.f32.mrf.mxu0 }
 0x2e2   :  { %2771 = vrcp.f32 %v707_v58  ;;  %v706_v61 = vadd.f32 1.0, %v2760_v59  ;;  %v749_v40 = vadd.f32 %v2540_v25, %v3173_v11 }
 0x2e3   :  { %v2762_v0 = vpop.eup %2761  ;;  %2773 = vpow2.f32 %v2144_v57  ;;  %v681_v37 = vpop.f32.mrf.mxu0 }
 0x2e4   :  { %2775 = vrcp.f32 %v706_v61  ;;  %v709_v10 = vadd.f32 1.0, %v2762_v0  ;;  %v748_v46 = vadd.f32 %v681_v37, %v3186_v34  ;;  %v2153_v37 = vld [vmem:[%s3921_s0 + $0x158] sm:$0xff] }
 0x2e5   :  { %v2764_v13 = vpop.eup %2763 }
 0x2e6   :  { %2777 = vrcp.f32 %v709_v10  ;;  %v708_v20 = vadd.f32 1.0, %v2764_v13 }
 0x2e7   :  { %v2766_v22 = vpop.eup %2765 }
 0x2e8   :  { %2779 = vrcp.f32 %v708_v20  ;;  %v735_v16 = vadd.f32 1.0, %v2766_v22 }
 0x2e9   :  { %v2768_v24 = vpop.eup %2767 }
 0x2ea   :  { %v734_v26 = vadd.f32 1.0, %v2768_v24  ;;  %2781 = vrcp.f32 %v735_v16 }
 0x2eb   :  { %v2770_v9 = vpop.eup %2769 }
 0x2ec   :  { %v737_v29 = vadd.f32 1.0, %v2770_v9  ;;  %2783 = vrcp.f32 %v734_v26 }
 0x2ee   :  { %2785 = vrcp.f32 %v737_v29 }
 0x2ef   :  { %v2772_v28 = vpop.eup %2771 }
 0x2f0   :  { %v2774_v31 = vpop.eup %2773  ;;  %v751_v32 = vmul.f32 %v2772_v28, %v747_v27 }
 0x2f1   :  { %v2776_v35 = vpop.eup %2775  ;;  %v736_v42 = vadd.f32 1.0, %v2774_v31 }
 0x2f2   :  { %v755_v38 = vadd.f32 %v2123_v30, %v751_v32  ;;  %v750_v39 = vmul.f32 %v2776_v35, %v746_v33  ;;  %v2150_v32 = vld [vmem:[%s3921_s0 + $0x140] sm:$0xff] }
 0x2f3   :  { %v2778_v41 = vpop.eup %2777 }
 0x2f4   :  { %2787 = vtanh.f32 %v755_v38  ;;  %v754_v44 = vadd.f32 %v2122_v36, %v750_v39  ;;  %v753_v45 = vmul.f32 %v2778_v41, %v749_v40  ;;  %v2152_v41 = vld [vmem:[%s3921_s0 + $0x150] sm:$0xff] }
 0x2f5   :  { %v2780_v47 = vpop.eup %2779 }
 0x2f6   :  { %2789 = vtanh.f32 %v754_v44  ;;  %v757_v49 = vadd.f32 %v2125_v43, %v753_v45  ;;  %v752_v50 = vmul.f32 %v2780_v47, %v748_v46 }
 0x2f7   :  { %2791 = vrcp.f32 %v736_v42  ;;  %v2782_v52 = vpop.eup %2781 }
 0x2f8   :  { %2793 = vtanh.f32 %v757_v49  ;;  %v756_v51 = vadd.f32 %v2124_v48, %v752_v50  ;;  %v763_v53 = vsub.f32 1.0, %v2782_v52  ;;  %v771_v61 = vmul.f32 %v2782_v52, %v3284_v60 }
 0x2f9   :  { %v2784_v54 = vpop.eup %2783 }
 0x2fa   :  { %2795 = vtanh.f32 %v756_v51  ;;  %v762_v0 = vsub.f32 1.0, %v2784_v54  ;;  %v770_v22 = vmul.f32 %v2784_v54, %v3290_v21 }
 0x2fb   :  { %v2786_v56 = vpop.eup %2785 }
 0x2fc   :  { %v765_v58 = vsub.f32 1.0, %v2786_v56  ;;  %v773_v9 = vmul.f32 %v2786_v56, %v3292_v55 }
 0x301   :  { %v2788_v57 = vpop.eup %2787 }
 0x302   :  { %v767_v59 = vmul.f32 %v2788_v57, %v763_v53 }
 0x303   :  { %v2790_v10 = vpop.eup %2789 }
 0x304   :  { %v2792_v13 = vpop.eup %2791  ;;  %v3376_v19 = vadd.f32 %v771_v61, %v767_v59  ;;  %v766_v20 = vmul.f32 %v2790_v10, %v762_v0 }
 0x305   :  { %v2794_v23 = vpop.eup %2793  ;;  %v764_v16 = vsub.f32 1.0, %v2792_v13  ;;  %v772_v28 = vmul.f32 %v2792_v13, %v3300_v63  ;;  %v2151_v63 = vld [vmem:[%s3921_s0 + $0x148] sm:$0xff] }
 0x306   :  { %v769_v24 = vmul.f32 %v2794_v23, %v765_v58  ;;  %779 = vst.msk [vmem:[#allocation2 + $0x48] sm:$0xff] %vm68_vm0, %v3376_v19  ;;  %v3382_v25 = vadd.f32 %v770_v22, %v766_v20 }
 0x307   :  { %v2796_v26 = vpop.eup %2795 }
 0x308   :  { %v3384_v60 = vadd.f32 %v773_v9, %v769_v24  ;;  %v768_v27 = vmul.f32 %v2796_v26, %v764_v16  ;;  %778 = vst.msk [vmem:[#allocation2 + $0x40] sm:$0xff] %vm68_vm0, %v3382_v25  ;;  %v2155_v9 = vld [vmem:[%s3921_s0 + $0x168] sm:$0xff] }
 0x30a   :  { %781 = vst.msk [vmem:[#allocation2 + $0x58] sm:$0xff] %vm68_vm0, %v3384_v60  ;;  %2541 = vmatprep.subr.mxu1 %v3384_v60  ;;  %v3392_v21 = vadd.f32 %v772_v28, %v768_v27 }
 0x30b   :  { %2542 = vmatpush3.msra.mxu1 %v3384_v60 }
 0x30c   :  { %780 = vst.msk [vmem:[#allocation2 + $0x50] sm:$0xff] %vm68_vm0, %v3392_v21  ;;  %2543 = vmatprep.subr.mxu1 %v3392_v21 }
 0x30d   :  { %2544 = vmatpush3.msra.mxu1 %v3392_v21 }
 0x30e   :  { %2545 = vmatprep.subr.mxu1 %v3376_v19 }
 0x30f   :  { %2546 = vmatpush3.msra.mxu1 %v3376_v19 }
 0x310   :  { %2547 = vmatprep.subr.mxu1 %v3382_v25 }
 0x311   :  { %2548 = vmatpush3.msra.mxu1 %v3382_v25 }
 0x312   :  { %2550 = vmatmul.mubr.msk.f32.vlgmr.msra.gmra.mxu1 %vm68_vm0, %v3049_v2  ;;  %v2147_v2 = vld [vmem:[%s3921_s0 + $0x128] sm:$0xff] }
 0x313   :  { %2552 = vmatprep.mubr.msk.f32.mxu1 %vm68_vm0, %v3054_v3 }
 0x316   :  { %2553 = vmatmul.mubr.msk.f32.gmra.mxu1 %vm68_vm0, %v3070_v5 }
 0x317   :  { %2555 = vmatprep.mubr.msk.f32.mxu1 %vm68_vm0, %v3087_v8 }
 0x31a   :  { %2556 = vmatmul.mubr.msk.f32.gmra.mxu1 %vm68_vm0, %v3114_v14 }
 0x31b   :  { %2558 = vmatprep.mubr.msk.f32.mxu1 %vm68_vm0, %v3119_v15 }
 0x31e   :  { %2559 = vmatmul.mubr.msk.f32.gmra.mxu1 %vm68_vm0, %v3138_v18 }
 0x31f   :  { %2561 = vmatprep.mubr.msk.f32.mxu1 %vm68_vm0, %v3063_v4  ;;  %v2146_v4 = vld [vmem:[%s3921_s0 + $0x120] sm:$0xff] }
 0x322   :  { %2562 = vmatmul.mubr.msk.f32.gmra.mxu1 %vm68_vm0, %v3077_v6 }
 0x323   :  { %2564 = vmatprep.mubr.msk.f32.mxu1 %vm68_vm0, %v3082_v7  ;;  %v2149_v7 = vld [vmem:[%s3921_s0 + $0x138] sm:$0xff] }
 0x326   :  { %2565 = vmatmul.mubr.msk.f32.gmra.mxu1 %vm68_vm0, %v3102_v12 }
 0x327   :  { %2601 = vmatprep.mubr.msk.f32.mxu1 %vm68_vm0, %v3044_v1  ;;  %v2148_v1 = vld [vmem:[%s3921_s0 + $0x130] sm:$0xff] }
 0x3d2   :  { %v2551_v3 = vpop.f32.mrf.mxu1 }
 0x3d3   :  { %v921_v5 = vadd.f32 %v2551_v3, %v2147_v2  ;;  %v2154_v2 = vld [vmem:[%s3921_s0 + $0x160] sm:$0xff] }
 0x3d4   :  { %v861_v6 = vpop.f32.mrf.mxu1 }
 0x3d5   :  { %v2171_v8 = vmul.f32 -1.442695, %v921_v5  ;;  %v920_v12 = vadd.f32 %v2146_v4, %v861_v6 }
 0x3d6   :  { %v2554_v14 = vpop.f32.mrf.mxu1 }
 0x3d7   :  { %2797 = vpow2.f32 %v2171_v8  ;;  %v2170_v15 = vmul.f32 -1.442695, %v920_v12  ;;  %v923_v18 = vadd.f32 %v2554_v14, %v2149_v7  ;;  %v2157_v12 = vld [vmem:[%s3921_s0 + $0x178] sm:$0xff] }
 0x3d8   :  { %v871_v55 = vpop.f32.mrf.mxu1 }
 0x3d9   :  { %2799 = vpow2.f32 %v2170_v15  ;;  %v2173_v29 = vmul.f32 -1.442695, %v923_v18  ;;  %v922_v30 = vadd.f32 %v2148_v1, %v871_v55  ;;  %v2156_v55 = vld [vmem:[%s3921_s0 + $0x170] sm:$0xff] }
 0x3da   :  { %v2557_v31 = vpop.f32.mrf.mxu1 }
 0x3db   :  { %2801 = vpow2.f32 %v2173_v29  ;;  %v2172_v33 = vmul.f32 -1.442695, %v922_v30  ;;  %v949_v35 = vadd.f32 %v2557_v31, %v2151_v63 }
 0x3dc   :  { %v881_v36 = vpop.f32.mrf.mxu1 }
 0x3dd   :  { %2803 = vpow2.f32 %v2172_v33  ;;  %v2175_v38 = vmul.f32 -1.442695, %v949_v35  ;;  %v948_v39 = vadd.f32 %v2150_v32, %v881_v36 }
 0x3de   :  { %v2560_v40 = vpop.f32.mrf.mxu1 }
 0x3df   :  { %v2174_v42 = vmul.f32 -1.442695, %v948_v39  ;;  %v951_v43 = vadd.f32 %v2560_v40, %v2153_v37  ;;  %2805 = vpow2.f32 %v2175_v38 }
 0x3e0   :  { %v891_v44 = vpop.f32.mrf.mxu1 }
 0x3e1   :  { %v2177_v45 = vmul.f32 -1.442695, %v951_v43  ;;  %v950_v46 = vadd.f32 %v2152_v41, %v891_v44  ;;  %2807 = vpow2.f32 %v2174_v42 }
 0x3e2   :  { %v2563_v56 = vpop.f32.mrf.mxu1 }
 0x3e3   :  { %2809 = vpow2.f32 %v2177_v45  ;;  %v2176_v48 = vmul.f32 -1.442695, %v950_v46  ;;  %v977_v22 = vadd.f32 %v2563_v56, %v3171_v62  ;;  %v3519_v56 = vld [vmem:[%s3918_s1 + $0x20] sm:$0xff] }
 0x3e4   :  { %v2798_v47 = vpop.eup %2797  ;;  %v901_v59 = vpop.f32.mrf.mxu1 }
 0x3e5   :  { %v937_v49 = vadd.f32 1.0, %v2798_v47  ;;  %v976_v27 = vadd.f32 %v901_v59, %v3176_v17  ;;  %v3540_v59 = vld [vmem:[%s3918_s1 + $0x38] sm:$0xff] }
 0x3e6   :  { %v2800_v50 = vpop.eup %2799  ;;  %v2566_v13 = vpop.f32.mrf.mxu1 }
 0x3e7   :  { %2811 = vrcp.f32 %v937_v49  ;;  %v936_v51 = vadd.f32 1.0, %v2800_v50  ;;  %v979_v6 = vadd.f32 %v2566_v13, %v3173_v11  ;;  %v3568_v13 = vld [vmem:[%s3918_s1 + $0x58] sm:$0xff] }
 0x3e8   :  { %v2802_v52 = vpop.eup %2801  ;;  %2813 = vpow2.f32 %v2176_v48  ;;  %v911_v3 = vpop.f32.mrf.mxu1 }
 0x3e9   :  { %2815 = vrcp.f32 %v936_v51  ;;  %v939_v53 = vadd.f32 1.0, %v2802_v52  ;;  %v978_v15 = vadd.f32 %v911_v3, %v3186_v34  ;;  %v2180_v3 = vld [vmem:[%s3921_s0 + $0x190] sm:$0xff] }
 0x3ea   :  { %v2804_v54 = vpop.eup %2803 }
 0x3eb   :  { %2817 = vrcp.f32 %v939_v53  ;;  %v938_v57 = vadd.f32 1.0, %v2804_v54  ;;  %v3512_v54 = vld [vmem:[%s3918_s1 + $0x18] sm:$0xff] }
 0x3ec   :  { %v2806_v58 = vpop.eup %2805 }
 0x3ed   :  { %2819 = vrcp.f32 %v938_v57  ;;  %v965_v10 = vadd.f32 1.0, %v2806_v58  ;;  %v3526_v57 = vld [vmem:[%s3918_s1 + $0x28] sm:$0xff]  ;;  %v3533_v58 = vld [vmem:[%s3918_s1 + $0x30] sm:$0xff] }
 0x3ee   :  { %v2808_v61 = vpop.eup %2807 }
 0x3ef   :  { %v964_v20 = vadd.f32 1.0, %v2808_v61  ;;  %2821 = vrcp.f32 %v965_v10  ;;  %v3547_v61 = vld [vmem:[%s3918_s1 + $0x40] sm:$0xff]  ;;  %v3561_v10 = vld [vmem:[%s3918_s1 + $0x50] sm:$0xff] }
 0x3f0   :  { %v2810_v0 = vpop.eup %2809 }
 0x3f1   :  { %v967_v24 = vadd.f32 1.0, %v2810_v0  ;;  %2823 = vrcp.f32 %v964_v20  ;;  %v3554_v0 = vld [vmem:[%s3918_s1 + $0x48] sm:$0xff]  ;;  %v3575_v20 = vld [vmem:[%s3918_s1] sm:$0xff] }
 0x3f3   :  { %2825 = vrcp.f32 %v967_v24  ;;  %v2178_v24 = vld [vmem:[%s3921_s0 + $0x180] sm:$0xff] }
 0x3f4   :  { %v2812_v23 = vpop.eup %2811 }
 0x3f5   :  { %v2814_v16 = vpop.eup %2813  ;;  %v981_v26 = vmul.f32 %v2812_v23, %v977_v22  ;;  %v2179_v22 = vld [vmem:[%s3921_s0 + $0x188] sm:$0xff] }
 0x3f6   :  { %v2816_v28 = vpop.eup %2815  ;;  %v966_v8 = vadd.f32 1.0, %v2814_v16 }
 0x3f7   :  { %v985_v4 = vadd.f32 %v2155_v9, %v981_v26  ;;  %v980_v5 = vmul.f32 %v2816_v28, %v976_v27  ;;  %v2181_v26 = vld [vmem:[%s3921_s0 + $0x198] sm:$0xff] }
 0x3f8   :  { %v2818_v7 = vpop.eup %2817 }
 0x3f9   :  { %2827 = vtanh.f32 %v985_v4  ;;  %v984_v14 = vadd.f32 %v2154_v2, %v980_v5  ;;  %v983_v1 = vmul.f32 %v2818_v7, %v979_v6  ;;  %v2183_v7 = vld [vmem:[%s3921_s0 + $0x1a8] sm:$0xff] }
 0x3fa   :  { %v2820_v18 = vpop.eup %2819 }
 0x3fb   :  { %2829 = vtanh.f32 %v984_v14  ;;  %v987_v63 = vadd.f32 %v2157_v12, %v983_v1  ;;  %v982_v29 = vmul.f32 %v2820_v18, %v978_v15  ;;  %v2182_v1 = vld [vmem:[%s3921_s0 + $0x1a0] sm:$0xff] }
 0x3fc   :  { %2831 = vrcp.f32 %v966_v8  ;;  %v2822_v31 = vpop.eup %2821 }
 0x3fd   :  { %2833 = vtanh.f32 %v987_v63  ;;  %v986_v30 = vadd.f32 %v2156_v55, %v982_v29  ;;  %v993_v32 = vsub.f32 1.0, %v2822_v31  ;;  %v1001_v39 = vmul.f32 %v2822_v31, %v3376_v19  ;;  %v2185_v63 = vld [vmem:[%s3921_s0 + $0x1b8] sm:$0xff] }
 0x3fe   :  { %v2824_v33 = vpop.eup %2823 }
 0x3ff   :  { %2835 = vtanh.f32 %v986_v30  ;;  %v992_v40 = vsub.f32 1.0, %v2824_v33  ;;  %v1000_v45 = vmul.f32 %v2824_v33, %v3382_v25 }
 0x400   :  { %v2826_v35 = vpop.eup %2825 }
 0x401   :  { %v995_v37 = vsub.f32 1.0, %v2826_v35  ;;  %v1003_v48 = vmul.f32 %v2826_v35, %v3384_v60  ;;  %v3498_v60 = vld [vmem:[%s3918_s1 + $0x8] sm:$0xff] }
 0x406   :  { %v2828_v36 = vpop.eup %2827 }
 0x407   :  { %v997_v38 = vmul.f32 %v2828_v36, %v993_v32  ;;  %v2184_v32 = vld [vmem:[%s3921_s0 + $0x1b0] sm:$0xff] }
 0x408   :  { %v2830_v41 = vpop.eup %2829 }
 0x409   :  { %v2832_v42 = vpop.eup %2831  ;;  %v3468_v43 = vadd.f32 %v1001_v39, %v997_v38  ;;  %v996_v44 = vmul.f32 %v2830_v41, %v992_v40 }
 0x40a   :  { %v2834_v46 = vpop.eup %2833  ;;  %v994_v49 = vsub.f32 1.0, %v2832_v42  ;;  %v1002_v53 = vmul.f32 %v2832_v42, %v3392_v21  ;;  %v3505_v21 = vld [vmem:[%s3918_s1 + $0x10] sm:$0xff] }
 0x40b   :  { %v999_v47 = vmul.f32 %v2834_v46, %v995_v37  ;;  %1009 = vst.msk [vmem:[#allocation2 + $0x68] sm:$0xff] %vm68_vm0, %v3468_v43  ;;  %v3474_v50 = vadd.f32 %v1000_v45, %v996_v44 }
 0x40c   :  { %v2836_v51 = vpop.eup %2835 }
 0x40d   :  { %v3476_v19 = vadd.f32 %v1003_v48, %v999_v47  ;;  %v998_v52 = vmul.f32 %v2836_v51, %v994_v49  ;;  %1008 = vst.msk [vmem:[#allocation2 + $0x60] sm:$0xff] %vm68_vm0, %v3474_v50 }
 0x40f   :  { %1011 = vst.msk [vmem:[#allocation2 + $0x78] sm:$0xff] %vm68_vm0, %v3476_v19  ;;  %2567 = vmatprep.subr.mxu0 %v3476_v19  ;;  %v3484_v25 = vadd.f32 %v1002_v53, %v998_v52 }
 0x410   :  { %2568 = vmatpush3.msra.mxu0 %v3476_v19 }
 0x411   :  { %1010 = vst.msk [vmem:[#allocation2 + $0x70] sm:$0xff] %vm68_vm0, %v3484_v25  ;;  %2569 = vmatprep.subr.mxu0 %v3484_v25 }
 0x412   :  { %2570 = vmatpush3.msra.mxu0 %v3484_v25 }
 0x413   :  { %2571 = vmatprep.subr.mxu0 %v3468_v43 }
 0x414   :  { %2572 = vmatpush3.msra.mxu0 %v3468_v43 }
 0x415   :  { %2573 = vmatprep.subr.mxu0 %v3474_v50 }
 0x416   :  { %2574 = vmatpush3.msra.mxu0 %v3474_v50 }
 0x417   :  { %2576 = vmatmul.mubr.msk.f32.vlgmr.msra.gmra.mxu0 %vm68_vm0, %v3498_v60 }
 0x418   :  { %2578 = vmatprep.mubr.msk.f32.mxu0 %vm68_vm0, %v3505_v21 }
 0x41b   :  { %2579 = vmatmul.mubr.msk.f32.gmra.mxu0 %vm68_vm0, %v3512_v54 }
 0x41c   :  { %2581 = vmatprep.mubr.msk.f32.mxu0 %vm68_vm0, %v3519_v56 }
 0x41f   :  { %2582 = vmatmul.mubr.msk.f32.gmra.mxu0 %vm68_vm0, %v3526_v57 }
 0x420   :  { %2584 = vmatprep.mubr.msk.f32.mxu0 %vm68_vm0, %v3533_v58 }
 0x423   :  { %2585 = vmatmul.mubr.msk.f32.gmra.mxu0 %vm68_vm0, %v3540_v59 }
 0x424   :  { %2587 = vmatprep.mubr.msk.f32.mxu0 %vm68_vm0, %v3547_v61 }
 0x427   :  { %2588 = vmatmul.mubr.msk.f32.gmra.mxu0 %vm68_vm0, %v3554_v0 }
 0x428   :  { %2590 = vmatprep.mubr.msk.f32.mxu0 %vm68_vm0, %v3561_v10 }
 0x42b   :  { %2591 = vmatmul.mubr.msk.f32.gmra.mxu0 %vm68_vm0, %v3568_v13 }
 0x42c   :  { %2627 = vmatprep.mubr.msk.f32.mxu0 %vm68_vm0, %v3575_v20 }
 0x4d7   :  { %v2577_v23 = vpop.f32.mrf.mxu0 }
 0x4d8   :  { %v1151_v9 = vadd.f32 %v2577_v23, %v2179_v22 }
 0x4d9   :  { %v1091_v16 = vpop.f32.mrf.mxu0 }
 0x4da   :  { %v2203_v27 = vmul.f32 -1.442695, %v1151_v9  ;;  %v1150_v28 = vadd.f32 %v2178_v24, %v1091_v16 }
 0x4db   :  { %v2580_v2 = vpop.f32.mrf.mxu0 }
 0x4dc   :  { %2837 = vpow2.f32 %v2203_v27  ;;  %v2202_v4 = vmul.f32 -1.442695, %v1150_v28  ;;  %v1153_v5 = vadd.f32 %v2580_v2, %v2181_v26  ;;  %v2187_v28 = vld [vmem:[%s3921_s0 + $0x1c8] sm:$0xff] }
 0x4dd   :  { %v1101_v6 = vpop.f32.mrf.mxu0 }
 0x4de   :  { %2839 = vpow2.f32 %v2202_v4  ;;  %v2205_v8 = vmul.f32 -1.442695, %v1153_v5  ;;  %v1152_v12 = vadd.f32 %v2180_v3, %v1101_v6  ;;  %v2186_v6 = vld [vmem:[%s3921_s0 + $0x1c0] sm:$0xff] }
 0x4df   :  { %v2583_v14 = vpop.f32.mrf.mxu0 }
 0x4e0   :  { %2841 = vpow2.f32 %v2205_v8  ;;  %v2204_v15 = vmul.f32 -1.442695, %v1152_v12  ;;  %v1179_v18 = vadd.f32 %v2583_v14, %v2183_v7 }
 0x4e1   :  { %v1111_v55 = vpop.f32.mrf.mxu0 }
 0x4e2   :  { %2843 = vpow2.f32 %v2204_v15  ;;  %v2207_v29 = vmul.f32 -1.442695, %v1179_v18  ;;  %v1178_v30 = vadd.f32 %v2182_v1, %v1111_v55  ;;  %v2189_v18 = vld [vmem:[%s3921_s0 + $0x1d8] sm:$0xff] }
 0x4e3   :  { %v2586_v31 = vpop.f32.mrf.mxu0 }
 0x4e4   :  { %v2206_v33 = vmul.f32 -1.442695, %v1178_v30  ;;  %v1181_v35 = vadd.f32 %v2586_v31, %v2185_v63  ;;  %2845 = vpow2.f32 %v2207_v29  ;;  %v2188_v31 = vld [vmem:[%s3921_s0 + $0x1d0] sm:$0xff] }
 0x4e5   :  { %v1121_v36 = vpop.f32.mrf.mxu0 }
 0x4e6   :  { %v2209_v37 = vmul.f32 -1.442695, %v1181_v35  ;;  %v1180_v38 = vadd.f32 %v2184_v32, %v1121_v36  ;;  %2847 = vpow2.f32 %v2206_v33 }
 0x4e7   :  { %v2589_v48 = vpop.f32.mrf.mxu0 }
 0x4e8   :  { %2849 = vpow2.f32 %v2209_v37  ;;  %v2208_v40 = vmul.f32 -1.442695, %v1180_v38  ;;  %v1207_v16 = vadd.f32 %v2589_v48, %v3171_v62 }
 0x4e9   :  { %v2838_v39 = vpop.eup %2837  ;;  %v1131_v52 = vpop.f32.mrf.mxu0 }
 0x4ea   :  { %v1167_v41 = vadd.f32 1.0, %v2838_v39  ;;  %v1206_v4 = vadd.f32 %v1131_v52, %v3176_v17 }
 0x4eb   :  { %v2840_v42 = vpop.eup %2839  ;;  %v2592_v24 = vpop.f32.mrf.mxu0 }
 0x4ec   :  { %2851 = vrcp.f32 %v1167_v41  ;;  %v1166_v44 = vadd.f32 1.0, %v2840_v42  ;;  %v1209_v14 = vadd.f32 %v2592_v24, %v3173_v11 }
 0x4ed   :  { %v2842_v45 = vpop.eup %2841  ;;  %2853 = vpow2.f32 %v2208_v40  ;;  %v1141_v7 = vpop.f32.mrf.mxu0 }
 0x4ee   :  { %2855 = vrcp.f32 %v1166_v44  ;;  %v1169_v46 = vadd.f32 1.0, %v2842_v45  ;;  %v1208_v29 = vadd.f32 %v1141_v7, %v3186_v34 }
 0x4ef   :  { %v2844_v47 = vpop.eup %2843 }
 0x4f0   :  { %2857 = vrcp.f32 %v1169_v46  ;;  %v1168_v49 = vadd.f32 1.0, %v2844_v47 }
 0x4f1   :  { %v2846_v51 = vpop.eup %2845 }
 0x4f2   :  { %2859 = vrcp.f32 %v1168_v49  ;;  %v1195_v23 = vadd.f32 1.0, %v2846_v51 }
 0x4f3   :  { %v2848_v53 = vpop.eup %2847 }
 0x4f4   :  { %v1194_v9 = vadd.f32 1.0, %v2848_v53  ;;  %2861 = vrcp.f32 %v1195_v23 }
 0x4f5   :  { %v2850_v22 = vpop.eup %2849 }
 0x4f6   :  { %v1197_v27 = vadd.f32 1.0, %v2850_v22  ;;  %2863 = vrcp.f32 %v1194_v9 }
 0x4f8   :  { %2865 = vrcp.f32 %v1197_v27  ;;  %v2210_v27 = vld [vmem:[%s3921_s0 + $0x1e0] sm:$0xff] }
 0x4f9   :  { %v2852_v26 = vpop.eup %2851 }
 0x4fa   :  { %v2854_v2 = vpop.eup %2853  ;;  %v1211_v3 = vmul.f32 %v2852_v26, %v1207_v16 }
 0x4fb   :  { %v2856_v5 = vpop.eup %2855  ;;  %v1196_v15 = vadd.f32 1.0, %v2854_v2 }
 0x4fc   :  { %v1215_v8 = vadd.f32 %v2187_v28, %v1211_v3  ;;  %v1210_v12 = vmul.f32 %v2856_v5, %v1206_v4  ;;  %v2213_v3 = vld [vmem:[%s3921_s0 + $0x1f8] sm:$0xff] }
 0x4fd   :  { %v2858_v1 = vpop.eup %2857 }
 0x4fe   :  { %2867 = vtanh.f32 %v1215_v8  ;;  %v1214_v55 = vadd.f32 %v2186_v6, %v1210_v12  ;;  %v1213_v63 = vmul.f32 %v2858_v1, %v1209_v14  ;;  %v2215_v14 = vld [vmem:[%s3921_s0 + $0x208] sm:$0xff] }
 0x4ff   :  { %v2860_v30 = vpop.eup %2859 }
 0x500   :  { %2869 = vtanh.f32 %v1214_v55  ;;  %v1217_v32 = vadd.f32 %v2189_v18, %v1213_v63  ;;  %v1212_v33 = vmul.f32 %v2860_v30, %v1208_v29  ;;  %v2214_v55 = vld [vmem:[%s3921_s0 + $0x200] sm:$0xff] }
 0x501   :  { %2871 = vrcp.f32 %v1196_v15  ;;  %v2862_v36 = vpop.eup %2861 }
 0x502   :  { %2873 = vtanh.f32 %v1217_v32  ;;  %v1216_v35 = vadd.f32 %v2188_v31, %v1212_v33  ;;  %v1223_v37 = vsub.f32 1.0, %v2862_v36  ;;  %v1231_v44 = vmul.f32 %v2862_v36, %v3468_v43  ;;  %v2217_v31 = vld [vmem:[%s3921_s0 + $0x218] sm:$0xff]  ;;  %v2216_v36 = vld [vmem:[%s3921_s0 + $0x210] sm:$0xff] }
 0x503   :  { %v2864_v38 = vpop.eup %2863 }
 0x504   :  { %2875 = vtanh.f32 %v1216_v35  ;;  %v1222_v45 = vsub.f32 1.0, %v2864_v38  ;;  %v1230_v51 = vmul.f32 %v2864_v38, %v3474_v50 }
 0x505   :  { %v2866_v39 = vpop.eup %2865 }
 0x506   :  { %v1225_v41 = vsub.f32 1.0, %v2866_v39  ;;  %v1233_v22 = vmul.f32 %v2866_v39, %v3476_v19  ;;  %v2211_v19 = vld [vmem:[%s3921_s0 + $0x1e8] sm:$0xff] }
 0x50b   :  { %v2868_v40 = vpop.eup %2867 }
 0x50c   :  { %v1227_v42 = vmul.f32 %v2868_v40, %v1223_v37 }
 0x50d   :  { %v2870_v46 = vpop.eup %2869 }
 0x50e   :  { %v2872_v47 = vpop.eup %2871  ;;  %v3620_v48 = vadd.f32 %v1231_v44, %v1227_v42  ;;  %v1226_v49 = vmul.f32 %v2870_v46, %v1222_v45 }
 0x50f   :  { %v2874_v52 = vpop.eup %2873  ;;  %v1224_v23 = vsub.f32 1.0, %v2872_v47  ;;  %v1232_v26 = vmul.f32 %v2872_v47, %v3484_v25 }
 0x510   :  { %v1229_v53 = vmul.f32 %v2874_v52, %v1225_v41  ;;  %1239 = vst.msk [vmem:[#allocation2 + $0x88] sm:$0xff] %vm68_vm0, %v3620_v48  ;;  %v3626_v24 = vadd.f32 %v1230_v51, %v1226_v49 }
 0x511   :  { %v2876_v9 = vpop.eup %2875 }
 0x512   :  { %v3628_v43 = vadd.f32 %v1233_v22, %v1229_v53  ;;  %v1228_v16 = vmul.f32 %v2876_v9, %v1224_v23  ;;  %1238 = vst.msk [vmem:[#allocation2 + $0x80] sm:$0xff] %vm68_vm0, %v3626_v24 }
 0x514   :  { %1241 = vst.msk [vmem:[#allocation2 + $0x98] sm:$0xff] %vm68_vm0, %v3628_v43  ;;  %2593 = vmatprep.subr.mxu1 %v3628_v43  ;;  %v3636_v50 = vadd.f32 %v1232_v26, %v1228_v16 }
 0x515   :  { %2594 = vmatpush3.msra.mxu1 %v3628_v43 }
 0x516   :  { %1240 = vst.msk [vmem:[#allocation2 + $0x90] sm:$0xff] %vm68_vm0, %v3636_v50  ;;  %2595 = vmatprep.subr.mxu1 %v3636_v50 }
 0x517   :  { %2596 = vmatpush3.msra.mxu1 %v3636_v50 }
 0x518   :  { %2597 = vmatprep.subr.mxu1 %v3620_v48 }
 0x519   :  { %2598 = vmatpush3.msra.mxu1 %v3620_v48 }
 0x51a   :  { %2599 = vmatprep.subr.mxu1 %v3626_v24 }
 0x51b   :  { %2600 = vmatpush3.msra.mxu1 %v3626_v24 }
 0x51c   :  { %2602 = vmatmul.mubr.msk.f32.vlgmr.msra.gmra.mxu1 %vm68_vm0, %v3498_v60 }
 0x51d   :  { %2604 = vmatprep.mubr.msk.f32.mxu1 %vm68_vm0, %v3505_v21 }
 0x520   :  { %2605 = vmatmul.mubr.msk.f32.gmra.mxu1 %vm68_vm0, %v3512_v54 }
 0x521   :  { %2607 = vmatprep.mubr.msk.f32.mxu1 %vm68_vm0, %v3519_v56 }
 0x524   :  { %2608 = vmatmul.mubr.msk.f32.gmra.mxu1 %vm68_vm0, %v3526_v57 }
 0x525   :  { %2610 = vmatprep.mubr.msk.f32.mxu1 %vm68_vm0, %v3533_v58 }
 0x528   :  { %2611 = vmatmul.mubr.msk.f32.gmra.mxu1 %vm68_vm0, %v3540_v59 }
 0x529   :  { %2613 = vmatprep.mubr.msk.f32.mxu1 %vm68_vm0, %v3547_v61 }
 0x52c   :  { %2614 = vmatmul.mubr.msk.f32.gmra.mxu1 %vm68_vm0, %v3554_v0 }
 0x52d   :  { %2616 = vmatprep.mubr.msk.f32.mxu1 %vm68_vm0, %v3561_v10 }
 0x530   :  { %2617 = vmatmul.mubr.msk.f32.gmra.mxu1 %vm68_vm0, %v3568_v13 }
 0x531   :  { %2653 = vmatprep.mubr.msk.f32.mxu1 %vm68_vm0, %v3575_v20  ;;  %v2212_v20 = vld [vmem:[%s3921_s0 + $0x1f0] sm:$0xff] }
 0x5dc   :  { %v2603_v25 = vpop.f32.mrf.mxu1 }
 0x5dd   :  { %v1381_v28 = vadd.f32 %v2603_v25, %v2211_v19 }
 0x5de   :  { %v1321_v2 = vpop.f32.mrf.mxu1 }
 0x5df   :  { %v2235_v4 = vmul.f32 -1.442695, %v1381_v28  ;;  %v1380_v5 = vadd.f32 %v2210_v27, %v1321_v2 }
 0x5e0   :  { %v2606_v6 = vpop.f32.mrf.mxu1 }
 0x5e1   :  { %2877 = vpow2.f32 %v2235_v4  ;;  %v2234_v7 = vmul.f32 -1.442695, %v1380_v5  ;;  %v1383_v8 = vadd.f32 %v2606_v6, %v2213_v3  ;;  %v2219_v4 = vld [vmem:[%s3921_s0 + $0x228] sm:$0xff] }
 0x5e2   :  { %v1331_v12 = vpop.f32.mrf.mxu1 }
 0x5e3   :  { %2879 = vpow2.f32 %v2234_v7  ;;  %v2237_v1 = vmul.f32 -1.442695, %v1383_v8  ;;  %v1382_v15 = vadd.f32 %v2212_v20, %v1331_v12  ;;  %v2218_v8 = vld [vmem:[%s3921_s0 + $0x220] sm:$0xff] }
 0x5e4   :  { %v2609_v18 = vpop.f32.mrf.mxu1 }
 0x5e5   :  { %2881 = vpow2.f32 %v2237_v1  ;;  %v2236_v63 = vmul.f32 -1.442695, %v1382_v15  ;;  %v1409_v29 = vadd.f32 %v2609_v18, %v2215_v14 }
 0x5e6   :  { %v1341_v30 = vpop.f32.mrf.mxu1 }
 0x5e7   :  { %2883 = vpow2.f32 %v2236_v63  ;;  %v2239_v32 = vmul.f32 -1.442695, %v1409_v29  ;;  %v1408_v33 = vadd.f32 %v2214_v55, %v1341_v30  ;;  %v2221_v63 = vld [vmem:[%s3921_s0 + $0x238] sm:$0xff] }
 0x5e8   :  { %v2612_v35 = vpop.f32.mrf.mxu1 }
 0x5e9   :  { %v2238_v37 = vmul.f32 -1.442695, %v1408_v33  ;;  %v1411_v38 = vadd.f32 %v2612_v35, %v2217_v31  ;;  %2885 = vpow2.f32 %v2239_v32  ;;  %v2220_v33 = vld [vmem:[%s3921_s0 + $0x230] sm:$0xff] }
 0x5ea   :  { %v1351_v39 = vpop.f32.mrf.mxu1 }
 0x5eb   :  { %v2241_v40 = vmul.f32 -1.442695, %v1411_v38  ;;  %v1410_v41 = vadd.f32 %v2216_v36, %v1351_v39  ;;  %2887 = vpow2.f32 %v2238_v37 }
 0x5ec   :  { %v2615_v53 = vpop.f32.mrf.mxu1 }
 0x5ed   :  { %2889 = vpow2.f32 %v2241_v40  ;;  %v2240_v44 = vmul.f32 -1.442695, %v1410_v41  ;;  %v1437_v28 = vadd.f32 %v2615_v53, %v3171_v62 }
 0x5ee   :  { %v2878_v42 = vpop.eup %2877  ;;  %v1361_v9 = vpop.f32.mrf.mxu1 }
 0x5ef   :  { %v1397_v45 = vadd.f32 1.0, %v2878_v42  ;;  %v1436_v20 = vadd.f32 %v1361_v9, %v3176_v17 }
 0x5f0   :  { %v2880_v46 = vpop.eup %2879  ;;  %v2618_v25 = vpop.f32.mrf.mxu1 }
 0x5f1   :  { %2891 = vrcp.f32 %v1397_v45  ;;  %v1396_v47 = vadd.f32 1.0, %v2880_v46  ;;  %v1439_v15 = vadd.f32 %v2618_v25, %v3173_v11 }
 0x5f2   :  { %v2882_v49 = vpop.eup %2881  ;;  %2893 = vpow2.f32 %v2240_v44  ;;  %v1371_v12 = vpop.f32.mrf.mxu1 }
 0x5f3   :  { %2895 = vrcp.f32 %v1396_v47  ;;  %v1399_v51 = vadd.f32 1.0, %v2882_v49  ;;  %v1438_v31 = vadd.f32 %v1371_v12, %v3186_v34 }
 0x5f4   :  { %v2884_v52 = vpop.eup %2883 }
 0x5f5   :  { %2897 = vrcp.f32 %v1399_v51  ;;  %v1398_v22 = vadd.f32 1.0, %v2884_v52 }
 0x5f6   :  { %v2886_v23 = vpop.eup %2885 }
 0x5f7   :  { %2899 = vrcp.f32 %v1398_v22  ;;  %v1425_v19 = vadd.f32 1.0, %v2886_v23 }
 0x5f8   :  { %v2888_v16 = vpop.eup %2887 }
 0x5f9   :  { %v1424_v27 = vadd.f32 1.0, %v2888_v16  ;;  %2901 = vrcp.f32 %v1425_v19 }
 0x5fa   :  { %v2890_v26 = vpop.eup %2889 }
 0x5fb   :  { %v1427_v3 = vadd.f32 1.0, %v2890_v26  ;;  %2903 = vrcp.f32 %v1424_v27 }
 0x5fd   :  { %2905 = vrcp.f32 %v1427_v3 }
 0x5fe   :  { %v2892_v2 = vpop.eup %2891 }
 0x5ff   :  { %v2894_v5 = vpop.eup %2893  ;;  %v1441_v6 = vmul.f32 %v2892_v2, %v1437_v28  ;;  %v2242_v2 = vld [vmem:[%s3921_s0 + $0x240] sm:$0xff] }
 0x600   :  { %v2896_v7 = vpop.eup %2895  ;;  %v1426_v55 = vadd.f32 1.0, %v2894_v5  ;;  %v2245_v5 = vld [vmem:[%s3921_s0 + $0x258] sm:$0xff] }
 0x601   :  { %v1445_v14 = vadd.f32 %v2219_v4, %v1441_v6  ;;  %v1440_v1 = vmul.f32 %v2896_v7, %v1436_v20 }
 0x602   :  { %v2898_v18 = vpop.eup %2897 }
 0x603   :  { %2907 = vtanh.f32 %v1445_v14  ;;  %v1444_v29 = vadd.f32 %v2218_v8, %v1440_v1  ;;  %v1443_v30 = vmul.f32 %v2898_v18, %v1439_v15  ;;  %v2244_v8 = vld [vmem:[%s3921_s0 + $0x250] sm:$0xff]  ;;  %v2247_v15 = vld [vmem:[%s3921_s0 + $0x268] sm:$0xff] }
 0x604   :  { %v2900_v32 = vpop.eup %2899 }
 0x605   :  { %2909 = vtanh.f32 %v1444_v29  ;;  %v1447_v35 = vadd.f32 %v2221_v63, %v1443_v30  ;;  %v1442_v36 = vmul.f32 %v2900_v32, %v1438_v31  ;;  %v2246_v29 = vld [vmem:[%s3921_s0 + $0x260] sm:$0xff] }
 0x606   :  { %2911 = vrcp.f32 %v1426_v55  ;;  %v2902_v38 = vpop.eup %2901 }
 0x607   :  { %2913 = vtanh.f32 %v1447_v35  ;;  %v1446_v37 = vadd.f32 %v2220_v33, %v1442_v36  ;;  %v1453_v39 = vsub.f32 1.0, %v2902_v38  ;;  %v1461_v46 = vmul.f32 %v2902_v38, %v3620_v48  ;;  %v2249_v33 = vld [vmem:[%s3921_s0 + $0x278] sm:$0xff]  ;;  %v2248_v38 = vld [vmem:[%s3921_s0 + $0x270] sm:$0xff] }
 0x608   :  { %v2904_v40 = vpop.eup %2903 }
 0x609   :  { %2915 = vtanh.f32 %v1446_v37  ;;  %v1452_v47 = vsub.f32 1.0, %v2904_v40  ;;  %v1460_v22 = vmul.f32 %v2904_v40, %v3626_v24 }
 0x60a   :  { %v2906_v41 = vpop.eup %2905 }
 0x60b   :  { %v1455_v44 = vsub.f32 1.0, %v2906_v41  ;;  %v1463_v16 = vmul.f32 %v2906_v41, %v3628_v43  ;;  %v2243_v43 = vld [vmem:[%s3921_s0 + $0x248] sm:$0xff] }
 0x610   :  { %v2908_v42 = vpop.eup %2907 }
 0x611   :  { %v1457_v45 = vmul.f32 %v2908_v42, %v1453_v39 }
 0x612   :  { %v2910_v49 = vpop.eup %2909 }
 0x613   :  { %v2912_v51 = vpop.eup %2911  ;;  %v3712_v52 = vadd.f32 %v1461_v46, %v1457_v45  ;;  %v1456_v53 = vmul.f32 %v2910_v49, %v1452_v47 }
 0x614   :  { %v2914_v23 = vpop.eup %2913  ;;  %v1454_v26 = vsub.f32 1.0, %v2912_v51  ;;  %v1462_v28 = vmul.f32 %v2912_v51, %v3636_v50 }
 0x615   :  { %v1459_v9 = vmul.f32 %v2914_v23, %v1455_v44  ;;  %1469 = vst.msk [vmem:[#allocation2 + $0xa8] sm:$0xff] %vm68_vm0, %v3712_v52  ;;  %v3718_v19 = vadd.f32 %v1460_v22, %v1456_v53 }
 0x616   :  { %v2916_v25 = vpop.eup %2915 }
 0x617   :  { %v3720_v48 = vadd.f32 %v1463_v16, %v1459_v9  ;;  %v1458_v27 = vmul.f32 %v2916_v25, %v1454_v26  ;;  %1468 = vst.msk [vmem:[#allocation2 + $0xa0] sm:$0xff] %vm68_vm0, %v3718_v19 }
 0x619   :  { %1471 = vst.msk [vmem:[#allocation2 + $0xb8] sm:$0xff] %vm68_vm0, %v3720_v48  ;;  %2619 = vmatprep.subr.mxu0 %v3720_v48  ;;  %v3728_v24 = vadd.f32 %v1462_v28, %v1458_v27 }
 0x61a   :  { %2620 = vmatpush3.msra.mxu0 %v3720_v48 }
 0x61b   :  { %1470 = vst.msk [vmem:[#allocation2 + $0xb0] sm:$0xff] %vm68_vm0, %v3728_v24  ;;  %2621 = vmatprep.subr.mxu0 %v3728_v24 }
 0x61c   :  { %2622 = vmatpush3.msra.mxu0 %v3728_v24 }
 0x61d   :  { %2623 = vmatprep.subr.mxu0 %v3712_v52 }
 0x61e   :  { %2624 = vmatpush3.msra.mxu0 %v3712_v52 }
 0x61f   :  { %2625 = vmatprep.subr.mxu0 %v3718_v19 }
 0x620   :  { %2626 = vmatpush3.msra.mxu0 %v3718_v19 }
 0x621   :  { %2628 = vmatmul.mubr.msk.f32.vlgmr.msra.gmra.mxu0 %vm68_vm0, %v3498_v60 }
 0x622   :  { %2630 = vmatprep.mubr.msk.f32.mxu0 %vm68_vm0, %v3505_v21 }
 0x625   :  { %2631 = vmatmul.mubr.msk.f32.gmra.mxu0 %vm68_vm0, %v3512_v54 }
 0x626   :  { %2633 = vmatprep.mubr.msk.f32.mxu0 %vm68_vm0, %v3519_v56 }
 0x629   :  { %2634 = vmatmul.mubr.msk.f32.gmra.mxu0 %vm68_vm0, %v3526_v57 }
 0x62a   :  { %2636 = vmatprep.mubr.msk.f32.mxu0 %vm68_vm0, %v3533_v58 }
 0x62d   :  { %2637 = vmatmul.mubr.msk.f32.gmra.mxu0 %vm68_vm0, %v3540_v59 }
 0x62e   :  { %2639 = vmatprep.mubr.msk.f32.mxu0 %vm68_vm0, %v3547_v61 }
 0x631   :  { %2640 = vmatmul.mubr.msk.f32.gmra.mxu0 %vm68_vm0, %v3554_v0 }
 0x632   :  { %2642 = vmatprep.mubr.msk.f32.mxu0 %vm68_vm0, %v3561_v10 }
 0x635   :  { %2643 = vmatmul.mubr.msk.f32.gmra.mxu0 %vm68_vm0, %v3568_v13 }
 0x6e1   :  { %v2629_v50 = vpop.f32.mrf.mxu0 }
 0x6e2   :  { %v1611_v3 = vadd.f32 %v2629_v50, %v2243_v43 }
 0x6e3   :  { %v1551_v4 = vpop.f32.mrf.mxu0 }
 0x6e4   :  { %v2267_v6 = vmul.f32 -1.442695, %v1611_v3  ;;  %v1610_v20 = vadd.f32 %v2242_v2, %v1551_v4 }
 0x6e5   :  { %v2632_v7 = vpop.f32.mrf.mxu0 }
 0x6e6   :  { %2917 = vpow2.f32 %v2267_v6  ;;  %v2266_v12 = vmul.f32 -1.442695, %v1610_v20  ;;  %v1613_v14 = vadd.f32 %v2632_v7, %v2245_v5  ;;  %v2251_v6 = vld [vmem:[%s3921_s0 + $0x288] sm:$0xff] }
 0x6e7   :  { %v1561_v1 = vpop.f32.mrf.mxu0 }
 0x6e8   :  { %2919 = vpow2.f32 %v2266_v12  ;;  %v2269_v18 = vmul.f32 -1.442695, %v1613_v14  ;;  %v1612_v55 = vadd.f32 %v2244_v8, %v1561_v1  ;;  %v2250_v14 = vld [vmem:[%s3921_s0 + $0x280] sm:$0xff] }
 0x6e9   :  { %v2635_v63 = vpop.f32.mrf.mxu0 }
 0x6ea   :  { %2921 = vpow2.f32 %v2269_v18  ;;  %v2268_v30 = vmul.f32 -1.442695, %v1612_v55  ;;  %v1639_v31 = vadd.f32 %v2635_v63, %v2247_v15 }
 0x6eb   :  { %v1571_v32 = vpop.f32.mrf.mxu0 }
 0x6ec   :  { %2923 = vpow2.f32 %v2268_v30  ;;  %v2271_v35 = vmul.f32 -1.442695, %v1639_v31  ;;  %v1638_v36 = vadd.f32 %v2246_v29, %v1571_v32  ;;  %v2253_v30 = vld [vmem:[%s3921_s0 + $0x298] sm:$0xff] }
 0x6ed   :  { %v2638_v37 = vpop.f32.mrf.mxu0 }
 0x6ee   :  { %v2270_v39 = vmul.f32 -1.442695, %v1638_v36  ;;  %v1641_v40 = vadd.f32 %v2638_v37, %v2249_v33  ;;  %2925 = vpow2.f32 %v2271_v35  ;;  %v2252_v36 = vld [vmem:[%s3921_s0 + $0x290] sm:$0xff] }
 0x6ef   :  { %v1581_v41 = vpop.f32.mrf.mxu0 }
 0x6f0   :  { %v2273_v42 = vmul.f32 -1.442695, %v1641_v40  ;;  %v1640_v44 = vadd.f32 %v2248_v38, %v1581_v41  ;;  %2927 = vpow2.f32 %v2270_v39 }
 0x6f1   :  { %v2641_v9 = vpop.f32.mrf.mxu0 }
 0x6f2   :  { %2929 = vpow2.f32 %v2273_v42  ;;  %v2272_v46 = vmul.f32 -1.442695, %v1640_v44  ;;  %v1667_v3 = vadd.f32 %v2641_v9, %v3171_v62 }
 0x6f3   :  { %v2918_v45 = vpop.eup %2917  ;;  %v1591_v25 = vpop.f32.mrf.mxu0 }
 0x6f4   :  { %v1627_v47 = vadd.f32 1.0, %v2918_v45  ;;  %v1666_v8 = vadd.f32 %v1591_v25, %v3176_v17 }
 0x6f5   :  { %v2920_v49 = vpop.eup %2919  ;;  %v2644_v50 = vpop.f32.mrf.mxu0 }
 0x6f6   :  { %2931 = vrcp.f32 %v1627_v47  ;;  %v1626_v51 = vadd.f32 1.0, %v2920_v49  ;;  %v1669_v55 = vadd.f32 %v2644_v50, %v3173_v11 }
 0x6f7   :  { %v2922_v53 = vpop.eup %2921  ;;  %2933 = vpow2.f32 %v2272_v46  ;;  %v1601_v1 = vpop.f32.mrf.mxu0 }
 0x6f8   :  { %2935 = vrcp.f32 %v1626_v51  ;;  %v1629_v22 = vadd.f32 1.0, %v2922_v53  ;;  %v1668_v33 = vadd.f32 %v1601_v1, %v3186_v34 }
 0x6f9   :  { %v2924_v23 = vpop.eup %2923 }
 0x6fa   :  { %2937 = vrcp.f32 %v1629_v22  ;;  %v1628_v16 = vadd.f32 1.0, %v2924_v23 }
 0x6fb   :  { %v2926_v26 = vpop.eup %2925 }
 0x6fc   :  { %2939 = vrcp.f32 %v1628_v16  ;;  %v1655_v43 = vadd.f32 1.0, %v2926_v26 }
 0x6fd   :  { %v2928_v27 = vpop.eup %2927 }
 0x6fe   :  { %v1654_v2 = vadd.f32 1.0, %v2928_v27  ;;  %2941 = vrcp.f32 %v1655_v43 }
 0x6ff   :  { %v2930_v28 = vpop.eup %2929 }
 0x700   :  { %v1657_v5 = vadd.f32 1.0, %v2930_v28  ;;  %2943 = vrcp.f32 %v1654_v2 }
 0x702   :  { %2945 = vrcp.f32 %v1657_v5  ;;  %v2279_v5 = vld [vmem:[%s3921_s0 + $0x2c8] sm:$0xff] }
 0x703   :  { %v2932_v4 = vpop.eup %2931 }
 0x704   :  { %v2934_v20 = vpop.eup %2933  ;;  %v1671_v7 = vmul.f32 %v2932_v4, %v1667_v3 }
 0x705   :  { %v2936_v12 = vpop.eup %2935  ;;  %v1656_v29 = vadd.f32 1.0, %v2934_v20 }
 0x706   :  { %v1675_v15 = vadd.f32 %v2251_v6, %v1671_v7  ;;  %v1670_v18 = vmul.f32 %v2936_v12, %v1666_v8  ;;  %v2278_v8 = vld [vmem:[%s3921_s0 + $0x2c0] sm:$0xff] }
 0x707   :  { %v2938_v63 = vpop.eup %2937 }
 0x708   :  { %2947 = vtanh.f32 %v1675_v15  ;;  %v1674_v31 = vadd.f32 %v2250_v14, %v1670_v18  ;;  %v1673_v32 = vmul.f32 %v2938_v63, %v1669_v55  ;;  %v2281_v15 = vld [vmem:[%s3921_s0 + $0x2d8] sm:$0xff] }
 0x709   :  { %v2940_v35 = vpop.eup %2939 }
 0x70a   :  { %2949 = vtanh.f32 %v1674_v31  ;;  %v1677_v37 = vadd.f32 %v2253_v30, %v1673_v32  ;;  %v1672_v38 = vmul.f32 %v2940_v35, %v1668_v33 }
 0x70b   :  { %2951 = vrcp.f32 %v1656_v29  ;;  %v2942_v40 = vpop.eup %2941  ;;  %v2280_v29 = vld [vmem:[%s3921_s0 + $0x2d0] sm:$0xff] }
 0x70c   :  { %2953 = vtanh.f32 %v1677_v37  ;;  %v1676_v39 = vadd.f32 %v2252_v36, %v1672_v38  ;;  %v1683_v41 = vsub.f32 1.0, %v2942_v40  ;;  %v1691_v49 = vmul.f32 %v2942_v40, %v3712_v52 }
 0x70d   :  { %v2944_v42 = vpop.eup %2943 }
 0x70e   :  { %2955 = vtanh.f32 %v1676_v39  ;;  %v1682_v51 = vsub.f32 1.0, %v2944_v42  ;;  %v1690_v16 = vmul.f32 %v2944_v42, %v3718_v19 }
 0x70f   :  { %v2946_v44 = vpop.eup %2945 }
 0x710   :  { %v1685_v46 = vsub.f32 1.0, %v2946_v44  ;;  %v1693_v27 = vmul.f32 %v2946_v44, %v3720_v48 }
 0x715   :  { %v2948_v45 = vpop.eup %2947 }
 0x716   :  { %v1687_v47 = vmul.f32 %v2948_v45, %v1683_v41 }
 0x717   :  { %v2950_v53 = vpop.eup %2949 }
 0x718   :  { %v2952_v22 = vpop.eup %2951  ;;  %v3802_v23 = vadd.f32 %v1691_v49, %v1687_v47  ;;  %v1686_v9 = vmul.f32 %v2950_v53, %v1682_v51 }
 0x719   :  { %v2954_v26 = vpop.eup %2953  ;;  %v1684_v28 = vsub.f32 1.0, %v2952_v22  ;;  %v1692_v3 = vmul.f32 %v2952_v22, %v3728_v24 }
 0x71a   :  { %v1689_v25 = vmul.f32 %v2954_v26, %v1685_v46  ;;  %1699 = vst.msk [vmem:[#allocation2 + $0xc8] sm:$0xff] %vm68_vm0, %v3802_v23  ;;  %v3808_v43 = vadd.f32 %v1690_v16, %v1686_v9 }
 0x71b   :  { %v2956_v50 = vpop.eup %2955 }
 0x71c   :  { %v3810_v52 = vadd.f32 %v1693_v27, %v1689_v25  ;;  %v1688_v2 = vmul.f32 %v2956_v50, %v1684_v28  ;;  %1698 = vst.msk [vmem:[#allocation2 + $0xc0] sm:$0xff] %vm68_vm0, %v3808_v43  ;;  %v2283_v28 = vld [vmem:[%s3921_s0 + $0x2e8] sm:$0xff] }
 0x71e   :  { %1701 = vst.msk [vmem:[#allocation2 + $0xd8] sm:$0xff] %vm68_vm0, %v3810_v52  ;;  %2645 = vmatprep.subr.mxu1 %v3810_v52  ;;  %v3818_v19 = vadd.f32 %v1692_v3, %v1688_v2 }
 0x71f   :  { %2646 = vmatpush3.msra.mxu1 %v3810_v52 }
 0x720   :  { %1700 = vst.msk [vmem:[#allocation2 + $0xd0] sm:$0xff] %vm68_vm0, %v3818_v19  ;;  %2647 = vmatprep.subr.mxu1 %v3818_v19 }
 0x721   :  { %2648 = vmatpush3.msra.mxu1 %v3818_v19 }
 0x722   :  { %2649 = vmatprep.subr.mxu1 %v3802_v23 }
 0x723   :  { %2650 = vmatpush3.msra.mxu1 %v3802_v23 }
 0x724   :  { %2651 = vmatprep.subr.mxu1 %v3808_v43 }
 0x725   :  { %2652 = vmatpush3.msra.mxu1 %v3808_v43 }
 0x726   :  { %2654 = vmatmul.mubr.msk.f32.vlgmr.msra.gmra.mxu1 %vm68_vm0, %v3498_v60  ;;  %v1933_v60 = vld [vmem:[%s3922_s3 + $0x8] sm:$0xff] }
 0x727   :  { %2656 = vmatprep.mubr.msk.f32.mxu1 %vm68_vm0, %v3505_v21  ;;  %2044 = vmatprep.mubr.f32.mxu0 %v1933_v60  ;;  %v2275_v21 = vld [vmem:[%s3921_s0 + $0x2a8] sm:$0xff] }
 0x72a   :  { %2657 = vmatmul.mubr.msk.f32.gmra.mxu1 %vm68_vm0, %v3512_v54 }
 0x72b   :  { %2659 = vmatprep.mubr.msk.f32.mxu1 %vm68_vm0, %v3519_v56  ;;  %v2274_v56 = vld [vmem:[%s3921_s0 + $0x2a0] sm:$0xff] }
 0x72e   :  { %2660 = vmatmul.mubr.msk.f32.gmra.mxu1 %vm68_vm0, %v3526_v57 }
 0x72f   :  { %2662 = vmatprep.mubr.msk.f32.mxu1 %vm68_vm0, %v3533_v58 }
 0x732   :  { %2663 = vmatmul.mubr.msk.f32.gmra.mxu1 %vm68_vm0, %v3540_v59  ;;  %v2277_v59 = vld [vmem:[%s3921_s0 + $0x2b8] sm:$0xff] }
 0x733   :  { %2665 = vmatprep.mubr.msk.f32.mxu1 %vm68_vm0, %v3547_v61 }
 0x736   :  { %2666 = vmatmul.mubr.msk.f32.gmra.mxu1 %vm68_vm0, %v3554_v0 }
 0x737   :  { %2668 = vmatprep.mubr.msk.f32.mxu1 %vm68_vm0, %v3561_v10 }
 0x73a   :  { %2669 = vmatmul.mubr.msk.f32.gmra.mxu1 %vm68_vm0, %v3568_v13  ;;  %v2276_v13 = vld [vmem:[%s3921_s0 + $0x2b0] sm:$0xff] }
 0x7e6   :  { %v2655_v54 = vpop.f32.mrf.mxu1 }
 0x7e7   :  { %v1841_v57 = vadd.f32 %v2655_v54, %v2275_v21  ;;  %v2282_v21 = vld [vmem:[%s3921_s0 + $0x2e0] sm:$0xff] }
 0x7e8   :  { %v1781_v58 = vpop.f32.mrf.mxu1 }
 0x7e9   :  { %v2299_v61 = vmul.f32 -1.442695, %v1841_v57  ;;  %v1840_v0 = vadd.f32 %v2274_v56, %v1781_v58 }
 0x7ea   :  { %v2658_v10 = vpop.f32.mrf.mxu1 }
 0x7eb   :  { %2957 = vpow2.f32 %v2299_v61  ;;  %v2298_v48 = vmul.f32 -1.442695, %v1840_v0  ;;  %v1843_v24 = vadd.f32 %v2658_v10, %v2277_v59  ;;  %v2285_v61 = vld [vmem:[%s3921_s0 + $0x2f8] sm:$0xff] }
 0x7ec   :  { %v1791_v4 = vpop.f32.mrf.mxu1 }
 0x7ed   :  { %2959 = vpow2.f32 %v2298_v48  ;;  %v2301_v6 = vmul.f32 -1.442695, %v1843_v24  ;;  %v1842_v20 = vadd.f32 %v2276_v13, %v1791_v4  ;;  %v2284_v48 = vld [vmem:[%s3921_s0 + $0x2f0] sm:$0xff] }
 0x7ee   :  { %v2661_v7 = vpop.f32.mrf.mxu1 }
 0x7ef   :  { %2961 = vpow2.f32 %v2301_v6  ;;  %v2300_v12 = vmul.f32 -1.442695, %v1842_v20  ;;  %v1869_v14 = vadd.f32 %v2661_v7, %v2279_v5 }
 0x7f0   :  { %v1801_v1 = vpop.f32.mrf.mxu1 }
 0x7f1   :  { %2963 = vpow2.f32 %v2300_v12  ;;  %v2303_v18 = vmul.f32 -1.442695, %v1869_v14  ;;  %v1868_v55 = vadd.f32 %v2278_v8, %v1801_v1 }
 0x7f2   :  { %v2664_v63 = vpop.f32.mrf.mxu1 }
 0x7f3   :  { %v2302_v30 = vmul.f32 -1.442695, %v1868_v55  ;;  %v1871_v31 = vadd.f32 %v2664_v63, %v2281_v15  ;;  %2965 = vpow2.f32 %v2303_v18 }
 0x7f4   :  { %v1811_v32 = vpop.f32.mrf.mxu1 }
 0x7f5   :  { %v2305_v33 = vmul.f32 -1.442695, %v1871_v31  ;;  %v1870_v35 = vadd.f32 %v2280_v29, %v1811_v32  ;;  %2967 = vpow2.f32 %v2302_v30 }
 0x7f6   :  { %v2667_v45 = vpop.f32.mrf.mxu1 }
 0x7f7   :  { %2969 = vpow2.f32 %v2305_v33  ;;  %v2304_v37 = vmul.f32 -1.442695, %v1870_v35  ;;  %v1897_v26 = vadd.f32 %v2667_v45, %v3171_v62  ;;  %v1948_v45 = vld [vmem:[#allocation2 + $0x60] sm:$0xff] }
 0x7f8   :  { %v2958_v36 = vpop.eup %2957  ;;  %v1821_v49 = vpop.f32.mrf.mxu1 }
 0x7f9   :  { %v1857_v38 = vadd.f32 1.0, %v2958_v36  ;;  %v1896_v3 = vadd.f32 %v1821_v49, %v3176_v17  ;;  %v1962_v49 = vld [vmem:[#allocation2 + $0xd0] sm:$0xff] }
 0x7fa   :  { %v2960_v39 = vpop.eup %2959  ;;  %v2670_v9 = vpop.f32.mrf.mxu1 }
 0x7fb   :  { %2971 = vrcp.f32 %v1857_v38  ;;  %v1856_v40 = vadd.f32 1.0, %v2960_v39  ;;  %v1899_v57 = vadd.f32 %v2670_v9, %v3173_v11  ;;  %v1960_v9 = vld [vmem:[#allocation2 + $0xc0] sm:$0xff] }
 0x7fc   :  { %v2962_v41 = vpop.eup %2961  ;;  %2973 = vpow2.f32 %v2304_v37  ;;  %v1831_v54 = vpop.f32.mrf.mxu1 }
 0x7fd   :  { %2975 = vrcp.f32 %v1856_v40  ;;  %v1859_v42 = vadd.f32 1.0, %v2962_v41  ;;  %v1898_v10 = vadd.f32 %v1831_v54, %v3186_v34  ;;  %v1950_v41 = vld [vmem:[#allocation2 + $0x70] sm:$0xff]  ;;  %v1939_v54 = vld [vmem:[#allocation2 + $0x18] sm:$0xff] }
 0x7fe   :  { %v2964_v44 = vpop.eup %2963 }
 0x7ff   :  { %2977 = vrcp.f32 %v1859_v42  ;;  %v1858_v46 = vadd.f32 1.0, %v2964_v44 }
 0x800   :  { %v2966_v47 = vpop.eup %2965 }
 0x801   :  { %2979 = vrcp.f32 %v1858_v46  ;;  %v1885_v22 = vadd.f32 1.0, %v2966_v47  ;;  %v1963_v46 = vld [vmem:[#allocation2 + $0xd8] sm:$0xff] }
 0x802   :  { %v2968_v51 = vpop.eup %2967  ;;  %v1947_v47 = vld [vmem:[#allocation2 + $0x58] sm:$0xff] }
 0x803   :  { %v1884_v16 = vadd.f32 1.0, %v2968_v51  ;;  %2981 = vrcp.f32 %v1885_v22  ;;  %v1946_v51 = vld [vmem:[#allocation2 + $0x50] sm:$0xff]  ;;  %v1945_v22 = vld [vmem:[#allocation2 + $0x48] sm:$0xff] }
 0x804   :  { %v2970_v53 = vpop.eup %2969 }
 0x805   :  { %v1887_v27 = vadd.f32 1.0, %v2970_v53  ;;  %2983 = vrcp.f32 %v1884_v16  ;;  %v1961_v53 = vld [vmem:[#allocation2 + $0xc8] sm:$0xff]  ;;  %v1944_v16 = vld [vmem:[#allocation2 + $0x40] sm:$0xff] }
 0x807   :  { %2985 = vrcp.f32 %v1887_v27  ;;  %v1958_v27 = vld [vmem:[#allocation2 + $0xb0] sm:$0xff] }
 0x808   :  { %v2972_v25 = vpop.eup %2971 }
 0x809   :  { %v2974_v50 = vpop.eup %2973  ;;  %v1901_v2 = vmul.f32 %v2972_v25, %v1897_v26  ;;  %v1959_v26 = vld [vmem:[#allocation2 + $0xb8] sm:$0xff] }
 0x80a   :  { %v2976_v60 = vpop.eup %2975  ;;  %v1886_v59 = vadd.f32 1.0, %v2974_v50  ;;  %v1943_v25 = vld [vmem:[#allocation2 + $0x38] sm:$0xff]  ;;  %v1957_v50 = vld [vmem:[#allocation2 + $0xa8] sm:$0xff] }
 0x80b   :  { %v1905_v56 = vadd.f32 %v2283_v28, %v1901_v2  ;;  %v1900_v62 = vmul.f32 %v2976_v60, %v1896_v3  ;;  %v1942_v28 = vld [vmem:[#allocation2 + $0x30] sm:$0xff]  ;;  %v1941_v2 = vld [vmem:[#allocation2 + $0x28] sm:$0xff]  ;;  %v1956_v3 = vld [vmem:[#allocation2 + $0xa0] sm:$0xff] }
 0x80c   :  { %v2978_v58 = vpop.eup %2977  ;;  %v1940_v60 = vld [vmem:[#allocation2 + $0x20] sm:$0xff] }
 0x80d   :  { %2987 = vtanh.f32 %v1905_v56  ;;  %v1904_v17 = vadd.f32 %v2282_v21, %v1900_v62  ;;  %v1903_v0 = vmul.f32 %v2978_v58, %v1899_v57  ;;  %v1955_v21 = vld [vmem:[#allocation2 + $0x98] sm:$0xff]  ;;  %v1954_v56 = vld [vmem:[#allocation2 + $0x90] sm:$0xff]  ;;  %v1953_v57 = vld [vmem:[#allocation2 + $0x88] sm:$0xff] }
 0x80e   :  { %v2980_v13 = vpop.eup %2979  ;;  %v1938_v62 = vld [vmem:[#allocation2 + $0x10] sm:$0xff]  ;;  %v1937_v58 = vld [vmem:[#allocation2 + $0x8] sm:$0xff] }
 0x80f   :  { %2989 = vtanh.f32 %v1904_v17  ;;  %v1907_v24 = vadd.f32 %v2285_v61, %v1903_v0  ;;  %v1902_v11 = vmul.f32 %v2980_v13, %v1898_v10  ;;  %v1932_v61 = vld [vmem:[%s3922_s3] sm:$0xff]  ;;  %v1935_v0 = vld [vmem:[%s3922_s3 + $0x18] sm:$0xf]  ;;  %v1934_v10 = vld [vmem:[%s3922_s3 + $0x10] sm:$0xf] }
 0x810   :  { %2991 = vrcp.f32 %v1886_v59  ;;  %v2982_v5 = vpop.eup %2981  ;;  %v1952_v59 = vld [vmem:[#allocation2 + $0x80] sm:$0xff] }
 0x811   :  { %2993 = vtanh.f32 %v1907_v24  ;;  %v1906_v4 = vadd.f32 %v2284_v48, %v1902_v11  ;;  %v1913_v6 = vsub.f32 1.0, %v2982_v5  ;;  %v1921_v12 = vmul.f32 %v2982_v5, %v3802_v23  ;;  %v1936_v17 = vld [vmem:[#allocation2] sm:$0xff]  ;;  %v1973_v11 = vpop.permute.xlu0 %1972 }
 0x812   :  { %v2984_v20 = vpop.eup %2983 }
 0x813   :  { %2995 = vtanh.f32 %v1906_v4  ;;  %v1912_v34 = vsub.f32 1.0, %v2984_v20  ;;  %v1920_v55 = vmul.f32 %v2984_v20, %v3808_v43 }
 0x814   :  { %v2986_v7 = vpop.eup %2985 }
 0x815   :  { %v1915_v14 = vsub.f32 1.0, %v2986_v7  ;;  %v1923_v31 = vmul.f32 %v2986_v7, %v3810_v52  ;;  %v1951_v52 = vld [vmem:[#allocation2 + $0x78] sm:$0xff]  ;;  %v1978_v7 = vpop.permute.xlu1 %1977 }
 0x81a   :  { %v2988_v8 = vpop.eup %2987 }
 0x81b   :  { %v1917_v1 = vmul.f32 %v2988_v8, %v1913_v6 }
 0x81c   :  { %v2990_v15 = vpop.eup %2989 }
 0x81d   :  { %v2992_v18 = vpop.eup %2991  ;;  %v1925_v63 = vadd.f32 %v1921_v12, %v1917_v1  ;;  %v1916_v29 = vmul.f32 %v2990_v15, %v1912_v34 }
 0x81e   :  { %v2994_v30 = vpop.eup %2993  ;;  %v1914_v32 = vsub.f32 1.0, %v2992_v18  ;;  %v1922_v23 = vmul.f32 %v2992_v18, %v3818_v19  ;;  %v1949_v19 = vld [vmem:[#allocation2 + $0x68] sm:$0xff] }
 0x81f   :  { %1929 = vst.msk [vmem:[#allocation2 + $0xe8] sm:$0xff] %vm68_vm0, %v1925_v63  ;;  %v1924_v33 = vadd.f32 %v1920_v55, %v1916_v29  ;;  %v1919_v35 = vmul.f32 %v2994_v30, %v1915_v14 }
 0x820   :  { %v2996_v36 = vpop.eup %2995 }
 0x821   :  { %1928 = vst.msk [vmem:[#allocation2 + $0xe0] sm:$0xff] %vm68_vm0, %v1924_v33  ;;  %v1927_v37 = vadd.f32 %v1923_v31, %v1919_v35  ;;  %v1918_v38 = vmul.f32 %v2996_v36, %v1914_v32 }
 0x823   :  { %1931 = vst.msk [vmem:[#allocation2 + $0xf8] sm:$0xff] %vm68_vm0, %v1927_v37  ;;  %v1926_v43 = vadd.f32 %v1922_v23, %v1918_v38 }
 0x825   :  { %1930 = vst.msk [vmem:[#allocation2 + $0xf0] sm:$0xff] %vm68_vm0, %v1926_v43 }
 0x826   :  { %v1965_v42 = vld [vmem:[#allocation2 + $0xe8] sm:$0xff] }
 0x828   :  { %v1964_v44 = vld [vmem:[#allocation2 + $0xe0] sm:$0xff] }
 0x82a   :  { %v1967_v39 = vld [vmem:[#allocation2 + $0xf8] sm:$0xff] }
 0x82b   :  { %2431 = vmatprep.subr.mxu0 %v1967_v39 }
 0x82c   :  { %2432 = vmatpush3.msra.mxu0 %v1951_v52  ;;  %v1966_v40 = vld [vmem:[#allocation2 + $0xf0] sm:$0xff] }
 0x82d   :  { %2433 = vmatprep.subr.mxu0 %v1966_v40 }
 0x82e   :  { %2434 = vmatpush3.msra.mxu0 %v1950_v41 }
 0x82f   :  { %2435 = vmatprep.subr.mxu0 %v1965_v42 }
 0x830   :  { %2436 = vmatpush3.msra.mxu0 %v1949_v19 }
 0x831   :  { %2437 = vmatprep.subr.mxu0 %v1964_v44 }
 0x832   :  { %2438 = vmatpush3.msra.mxu0 %v1948_v45 }
 0x833   :  { %2439 = vmatprep.subr.mxu0 %v1963_v46 }
 0x834   :  { %2440 = vmatpush3.msra.mxu0 %v1947_v47 }
 0x835   :  { %2441 = vmatprep.subr.mxu0 %v1962_v49 }
 0x836   :  { %2442 = vmatpush3.msra.mxu0 %v1946_v51 }
 0x837   :  { %2443 = vmatprep.subr.mxu0 %v1961_v53 }
 0x838   :  { %2444 = vmatpush3.msra.mxu0 %v1945_v22 }
 0x839   :  { %2445 = vmatprep.subr.mxu0 %v1960_v9 }
 0x83a   :  { %2446 = vmatpush3.msra.mxu0 %v1944_v16 }
 0x83b   :  { %2447 = vmatprep.subr.mxu0 %v1959_v26 }
 0x83c   :  { %2448 = vmatpush3.msra.mxu0 %v1943_v25 }
 0x83d   :  { %2449 = vmatprep.subr.mxu0 %v1958_v27 }
 0x83e   :  { %2450 = vmatpush3.msra.mxu0 %v1942_v28 }
 0x83f   :  { %2451 = vmatprep.subr.mxu0 %v1957_v50 }
 0x840   :  { %2452 = vmatpush3.msra.mxu0 %v1941_v2 }
 0x841   :  { %2453 = vmatprep.subr.mxu0 %v1956_v3 }
 0x842   :  { %2454 = vmatpush3.msra.mxu0 %v1940_v60 }
 0x843   :  { %2455 = vmatprep.subr.mxu0 %v1955_v21 }
 0x844   :  { %2456 = vmatpush3.msra.mxu0 %v1939_v54 }
 0x845   :  { %2457 = vmatprep.subr.mxu0 %v1954_v56 }
 0x846   :  { %2458 = vmatpush3.msra.mxu0 %v1938_v62 }
 0x847   :  { %2459 = vmatprep.subr.mxu0 %v1953_v57 }
 0x848   :  { %2460 = vmatpush3.msra.mxu0 %v1937_v58 }
 0x849   :  { %2461 = vmatprep.subr.mxu0 %v1952_v59 }
 0x84a   :  { %2462 = vmatpush3.msra.mxu0 %v1936_v17 }
 0x84b   :  { %2045 = vmatmul.mubr.f32.vlgmr.msra.gmra.mxu0 %v1932_v61 }
 0x84c   :  { %2049 = vmatprep.mubr.f32.mxu0 %v1935_v0 }
 0x84f   :  { %2050 = vmatmul.mubr.f32.gmra.mxu0 %v1934_v10 }
 0x90b   :  { %v2463_v13 = vpop.f32.mrf.mxu0 }
 0x90d   :  { %v2464_v48 = vpop.f32.mrf.mxu0 }
 0x90e   :  { %v2465_v24 = vadd.f32 %v2464_v48, %v2463_v13 }
 0x90f   :  { %v2466_v4 = vpop.f32.mrf.mxu0 }
 0x910   :  { %v2047_v5 = vadd.f32 %v2465_v24, %v1973_v11 }
 0x911   :  { %v2467_v6 = vpop.f32.mrf.mxu0 }
 0x912   :  { %2055 = vst.msk [vmem:[%s3923_s5] sm:$0xff] %vm68_vm0, %v2047_v5  ;;  %v2468_v20 = vadd.f32 %v2467_v6, %v2466_v4 }
 0x914   :  { %v2052_v8 = vadd.f32 %v2468_v20, %v1978_v7 }
 0x916   :  { %2057 = vst.msk [vmem:[%s3923_s5 + $0x8] sm:$0xf] %vm2056_vm1, %v2052_v8 }

</bundles_post_ra>
